<compile_context>
chip_gen: v5e
topology: v5e:2x2
jax: 0.10.0
libtpu: 0.0.40
codegen_flags: <defaults>
</compile_context>

<pallas_src>
import functools
import math

import jax
import jax.numpy as jnp
from jax import lax
from jax.experimental import pallas as pl
from jax.experimental.pallas import tpu as pltpu


# ----------------------------------------------------------------------------
# Pallas kernel: switched (multi-branch) conv as one fused lane-dense matmul
# ----------------------------------------------------------------------------
def _switched_conv_kernel(p_ref, sel_ref, w_ref, b_ref, o_ref, *,
                          breadth, cout, fuse_relu):
    # Single MXU matmul covering all branches:
    #   (TM, K) bf16 @ (K, S*Cout) bf16 -> (TM, S*Cout) f32  (lane-dense)
    y = jnp.dot(p_ref[...], w_ref[...], preferred_element_type=jnp.float32)
    sel = sel_ref[...]                       # (TM, S) f32 hard one-hot
    acc = b_ref[...]                         # (1, Cout) f32; bias folded into init
    for s in range(breadth):                 # breadth is small & static
        acc = acc + y[:, s * cout:(s + 1) * cout] * sel[:, s:s + 1]
    if fuse_relu:
        acc = jnp.maximum(acc, 0.0)
    o_ref[...] = acc.astype(o_ref.dtype)


def _round_up(x, m):
    return ((x + m - 1) // m) * m


def _choose_row_tile(M):
    # Adaptive row tile: avoid padding tiny M up to 128, keep >=2 grid steps
    # when feasible (v7x shards parallel axes over its 2 TensorCores), and
    # grow toward 256/512 rows for large M to amortize per-step overhead.
    if M <= 16:
        return 16
    if M <= 512:
        return _round_up((M + 1) // 2, 16)
    if M <= 4096:
        return 256
    return 512


def switched_conv_matmul(patches, selector, w_fused, bias, *,
                         breadth, cout, fuse_relu=False):
    """patches (M,K) bf16, selector (M,S) f32 one-hot, w_fused (K,S*Cout) bf16,
    bias (Cout,) f32."""
    M, K = patches.shape
    G = breadth * cout
    TM = _choose_row_tile(M)
    Mp = _round_up(M, TM)
    if Mp != M:
        patches = jnp.pad(patches, ((0, Mp - M), (0, 0)))
        selector = jnp.pad(selector, ((0, Mp - M), (0, 0)))
    bias2 = bias.reshape(1, cout)

    out = pl.pallas_call(
        functools.partial(_switched_conv_kernel, breadth=breadth, cout=cout,
                          fuse_relu=fuse_relu),
        out_shape=jax.ShapeDtypeStruct((Mp, cout), jnp.float32),
        grid_spec=pltpu.PrefetchScalarGridSpec(
            num_scalar_prefetch=0,
            grid=(Mp // TM,),
            in_specs=[
                pl.BlockSpec((TM, K), lambda i: (i, 0)),
                pl.BlockSpec((TM, breadth), lambda i: (i, 0)),
                pl.BlockSpec((K, G), lambda i: (0, 0)),      # constant block
                pl.BlockSpec((1, cout), lambda i: (0, 0)),
            ],
            out_specs=pl.BlockSpec((TM, cout), lambda i: (i, 0)),
        ),
        compiler_params=pltpu.CompilerParams(dimension_semantics=("parallel",)),
    )(patches, selector, w_fused, bias2)
    return out[:M]


# ----------------------------------------------------------------------------
# Plain-JAX glue: im2col, coupler (lambda) and hard routing gate
# ----------------------------------------------------------------------------
def im2col_nchw(x, ksz, stride, pad):
    """x (B,C,H,W) -> patches (B,Ho,Wo, ksz*ksz*C) ordered (dy, dx, c)."""
    # TODO(synk): im2col is still materialized by XLA (ksz^2 HBM expansion);
    # an in-kernel per-tile gather of the input rows would remove this traffic.
    B, C, H, W = x.shape
    Ho = (H + 2 * pad - ksz) // stride + 1
    Wo = (W + 2 * pad - ksz) // stride + 1
    xp = jnp.pad(x, ((0, 0), (0, 0), (pad, pad), (pad, pad)))
    xp = jnp.transpose(xp, (0, 2, 3, 1))  # NHWC
    cols = []
    for dy in range(ksz):
        for dx in range(ksz):
            cols.append(xp[:, dy:dy + stride * (Ho - 1) + 1:stride,
                           dx:dx + stride * (Wo - 1) + 1:stride, :])
    patches = jnp.concatenate(cols, axis=-1)
    return patches, Ho, Wo


def conv1x1(x, w, b=None, stride=1):
    y = lax.conv_general_dilated(x, w, (stride, stride), "VALID",
                                 dimension_numbers=("NCHW", "OIHW", "NCHW"))
    if b is not None:
        y = y + b.reshape(1, -1, 1, 1)
    return y


def batchnorm_train(x, eps=1e-5):
    # training-mode BatchNorm2d with freshly-initialized affine (gamma=1, beta=0)
    mean = jnp.mean(x, axis=(0, 2, 3), keepdims=True)
    var = jnp.var(x, axis=(0, 2, 3), keepdims=True)
    return (x - mean) * lax.rsqrt(var + eps)


def lambda_layer(x, p, heads=2, dim_k=16, dim_u=1):
    """lucidrains LambdaLayer with local contexts (r=23)."""
    B, C, H, W = x.shape
    q = conv1x1(x, p["to_q"])                 # (B, dim_k*heads, H, W), no bias
    k = conv1x1(x, p["to_k"])                 # (B, dim_k*dim_u, H, W)
    v = conv1x1(x, p["to_v"])                 # (B, dim_v*dim_u, H, W)
    q = batchnorm_train(q)
    v = batchnorm_train(v)
    dim_v = v.shape[1] // dim_u

    qf = q.reshape(B, heads, dim_k, H * W)
    kf = k.reshape(B, dim_u, dim_k, H * W)
    vf = v.reshape(B, dim_u, dim_v, H * W)
    kf = jax.nn.softmax(kf, axis=-1)

    lam_c = jnp.einsum("bukm,buvm->bkv", kf, vf)
    Yc = jnp.einsum("bhkn,bkv->bhvn", qf, lam_c)

    # positional lambdas: Conv3d(dim_u -> dim_k, kernel (1, r, r)) == per-v 2D conv
    r = p["pos_conv_w"].shape[-1]
    vr = vf.reshape(B, dim_u, dim_v, H, W)
    v2 = jnp.transpose(vr, (0, 2, 1, 3, 4)).reshape(B * dim_v, dim_u, H, W)
    lp = lax.conv_general_dilated(v2, p["pos_conv_w"], (1, 1),
                                  [(r // 2, r // 2), (r // 2, r // 2)],
                                  dimension_numbers=("NCHW", "OIHW", "NCHW"))
    lp = lp + p["pos_conv_b"].reshape(1, dim_k, 1, 1)
    lam_p = jnp.transpose(lp.reshape(B, dim_v, dim_k, H, W), (0, 2, 1, 3, 4))
    Yp = jnp.einsum("bhkn,bkvn->bhvn", qf, lam_p.reshape(B, dim_k, dim_v, H * W))

    Y = Yc + Yp                               # (B, heads, dim_v, H*W)
    return Y.reshape(B, heads * dim_v, H, W)


def coupler_forward(x, cp, stride):
    """'lambda' coupler -> hard top-1 routing mask (B, breadth, Ho, Wo)."""
    y = conv1x1(x, cp["pre_w"], cp["pre_b"])
    y = jnp.maximum(batchnorm_train(y), 0.0)
    y = lambda_layer(y, cp["lam"])
    y = jnp.maximum(batchnorm_train(y), 0.0)
    y = conv1x1(y, cp["post_w"], cp["post_b"], stride=stride)
    # argmax on logits == argmax on softmax(logits): drop the exp/normalize pass
    idx = jnp.argmax(y, axis=1)
    return jax.nn.one_hot(idx, y.shape[1], axis=1, dtype=jnp.float32)


def switched_conv_forward(x, p, *, stride, padding, fuse_relu=False):
    B, Cin, H, W = x.shape
    ksz, S, Cout = p["ksz"], p["breadth"], p["cout"]
    selector = coupler_forward(x, p["coupler"], stride)              # (B,S,Ho,Wo)
    patches, Ho, Wo = im2col_nchw(x.astype(jnp.bfloat16), ksz, stride, padding)
    M = B * Ho * Wo
    K = ksz * ksz * Cin
    sel = jnp.transpose(selector, (0, 2, 3, 1)).reshape(M, S)
    out_flat = switched_conv_matmul(patches.reshape(M, K), sel,
                                    p["weight_fused"], p["bias"],
                                    breadth=S, cout=Cout, fuse_relu=fuse_relu)
    return jnp.transpose(out_flat.reshape(B, Ho, Wo, Cout), (0, 3, 1, 2))


# ----------------------------------------------------------------------------
# Deterministic parameter construction
# ----------------------------------------------------------------------------
def _normal(key, shape, scale):
    return scale * jax.random.normal(key, shape, dtype=jnp.float32)


def init_switched_conv(key, cin, cout, ksz, breadth, coupler_dim_in):
    ks = jax.random.split(key, 8)
    fan_in = cin * ksz * ksz
    w = _normal(ks[0], (breadth, ksz, ksz, cin, cout), 1.0 / math.sqrt(fan_in))
    # (S, K, Cout) -> fused (K, S*Cout): one lane-dense MXU matmul covers all
    # branches.  Stored as bf16 (f32 accumulation inside the kernel).
    w_fused = jnp.transpose(w.reshape(breadth, ksz * ksz * cin, cout), (1, 0, 2))
    w_fused = w_fused.reshape(ksz * ksz * cin, breadth * cout).astype(jnp.bfloat16)
    bias = _normal(ks[1], (cout,), 0.01)
    dim_k, heads, dim_u = 16, 2, 1
    dim_v = breadth // heads
    cd = coupler_dim_in
    coupler = dict(
        pre_w=_normal(ks[2], (cd, cd, 1, 1), 1.0 / math.sqrt(cd)),
        pre_b=jnp.zeros((cd,), jnp.float32),
        post_w=_normal(ks[3], (breadth, breadth, 1, 1), 1.0 / math.sqrt(breadth)),
        post_b=jnp.zeros((breadth,), jnp.float32),
        lam=dict(
            to_q=_normal(ks[4], (dim_k * heads, cd, 1, 1), 1.0 / math.sqrt(cd)),
            to_k=_normal(ks[5], (dim_k * dim_u, cd, 1, 1), 1.0 / math.sqrt(cd)),
            to_v=_normal(ks[6], (dim_v * dim_u, cd, 1, 1), 1.0 / math.sqrt(cd)),
            pos_conv_w=_normal(ks[7], (dim_k, dim_u, 23, 23), 1.0 / 23.0),
            pos_conv_b=jnp.zeros((dim_k,), jnp.float32),
        ),
    )
    return dict(weight_fused=w_fused, bias=bias, ksz=ksz, breadth=breadth,
                cout=cout, coupler=coupler)


def make_encoder(key, in_channel, channel, n_res_block, n_res_channel, stride, breadth):
    keys = iter(jax.random.split(key, 32))
    blocks = []
    if stride == 4:
        blocks.append(("sconv",
                       init_switched_conv(next(keys), in_channel, channel // 2, 5, breadth, in_channel),
                       dict(stride=2, pad=2, relu=True)))
        blocks.append(("sconv",
                       init_switched_conv(next(keys), channel // 2, channel, 5, breadth, channel // 2),
                       dict(stride=2, pad=2, relu=True)))
        blocks.append(("sconv",
                       init_switched_conv(next(keys), channel, channel, 3, breadth, channel),
                       dict(stride=1, pad=1, relu=False)))
    elif stride == 2:
        blocks.append(("sconv",
                       init_switched_conv(next(keys), in_channel, channel // 2, 5, breadth, in_channel),
                       dict(stride=2, pad=2, relu=True)))
        blocks.append(("sconv",
                       init_switched_conv(next(keys), channel // 2, channel, 3, breadth, channel // 2),
                       dict(stride=1, pad=1, relu=False)))
    for _ in range(n_res_block):
        blocks.append(("res", dict(
            conv1=init_switched_conv(next(keys), channel, n_res_channel, 3, breadth, channel),
            conv2=init_switched_conv(next(keys), n_res_channel, channel, 1, breadth, n_res_channel),
        ), dict()))
    return blocks


def encoder_forward(blocks, x):
    # TODO(synk): the res-block pair (3x3 sconv -> 1x1 sconv) could be fused
    # into one pallas_call chained through VMEM scratch to cut launches further.
    for kind, p, cfg in blocks:
        if kind == "sconv":
            x = switched_conv_forward(x, p, stride=cfg["stride"],
                                      padding=cfg["pad"], fuse_relu=cfg["relu"])
        else:  # ResBlock: ReLU -> SConv3 -> ReLU -> SConv1, then residual add
            y = jnp.maximum(x, 0.0)
            y = switched_conv_forward(y, p["conv1"], stride=1, padding=1, fuse_relu=True)
            y = switched_conv_forward(y, p["conv2"], stride=1, padding=0, fuse_relu=False)
            x = x + y
    return jnp.maximum(x, 0.0)  # final ReLU appended by Encoder


# ----------------------------------------------------------------------------
if __name__ == "__main__":
    key = jax.random.PRNGKey(0)
    kp, kx = jax.random.split(key)

    in_channel, channel = 4, 32
    n_res_block, n_res_channel = 2, 16
    stride, breadth = 4, 4
    B, H, W = 2, 16, 16

    blocks = make_encoder(kp, in_channel, channel, n_res_block, n_res_channel,
                          stride, breadth)
    x = jax.random.normal(kx, (B, in_channel, H, W), dtype=jnp.float32)

    fwd = jax.jit(lambda inp: encoder_forward(blocks, inp))
    out = jax.block_until_ready(fwd(x))
    assert out.shape == (B, channel, H // 4, W // 4), out.shape
    assert bool(jnp.all(jnp.isfinite(out)))
    print("KERNEL_OK")
</pallas_src>

<mosaic_0001>
module attributes {stable_mosaic.version = 11 : i64} {
  func.func @_switched_conv_kernel(%arg0: i32, %arg1: memref<64x100xbf16, #tpu.memory_space<vmem>>, %arg2: memref<64x4xf32, #tpu.memory_space<vmem>>, %arg3: memref<100x64xbf16, #tpu.memory_space<vmem>>, %arg4: memref<1x16xf32, #tpu.memory_space<vmem>>, %arg5: memref<64x16xf32, #tpu.memory_space<vmem>>) attributes {dimension_semantics = [#tpu.dimension_semantics<parallel>], iteration_bounds = array<i64: 2>, scalar_prefetch = 0 : i64, scratch_operands = 0 : i64, tpu.core_type = #tpu.core_type<tc>, window_params = [{transform_indices = @transform_0, window_bounds = array<i64: 64, 100>}, {transform_indices = @transform_1, window_bounds = array<i64: 64, 4>}, {pipeline_mode = #tpu.pipeline_mode<synchronous>, transform_indices = @transform_2, window_bounds = array<i64: 100, 64>}, {pipeline_mode = #tpu.pipeline_mode<synchronous>, transform_indices = @transform_3, window_bounds = array<i64: 1, 16>}, {transform_indices = @transform_4, window_bounds = array<i64: 64, 16>}]} {
    %c0 = arith.constant 0 : index
    %c0_0 = arith.constant 0 : index
    %0 = vector.load %arg1[%c0, %c0_0] : memref<64x100xbf16, #tpu.memory_space<vmem>>, vector<64x100xbf16>
    %c0_1 = arith.constant 0 : index
    %c0_2 = arith.constant 0 : index
    %1 = vector.load %arg3[%c0_1, %c0_2] : memref<100x64xbf16, #tpu.memory_space<vmem>>, vector<100x64xbf16>
    %cst = arith.constant dense<0.000000e+00> : vector<64x64xf32>
    %2 = tpu.matmul %0, %1, %cst {dimension_numbers = #tpu.dot_dimension_numbers<[1], [0], [0], [1], [0, 0, 1, 1], [], []>} : vector<64x100xbf16>, vector<100x64xbf16>, vector<64x64xf32> -> vector<64x64xf32>
    %c0_3 = arith.constant 0 : index
    %c0_4 = arith.constant 0 : index
    %3 = vector.load %arg2[%c0_3, %c0_4] : memref<64x4xf32, #tpu.memory_space<vmem>>, vector<64x4xf32>
    %c0_5 = arith.constant 0 : index
    %c0_6 = arith.constant 0 : index
    %4 = vector.load %arg4[%c0_5, %c0_6] : memref<1x16xf32, #tpu.memory_space<vmem>>, vector<1x16xf32>
    %5 = vector.extract_strided_slice %2 {offsets = [0, 0], sizes = [64, 16], strides = [1, 1]} : vector<64x64xf32> to vector<64x16xf32>
    %6 = vector.extract_strided_slice %3 {offsets = [0, 0], sizes = [64, 1], strides = [1, 1]} : vector<64x4xf32> to vector<64x1xf32>
    %7 = vector.broadcast %6 : vector<64x1xf32> to vector<64x16xf32>
    %8 = arith.mulf %5, %7 : vector<64x16xf32>
    %9 = vector.broadcast %4 : vector<1x16xf32> to vector<64x16xf32>
    %10 = arith.addf %9, %8 : vector<64x16xf32>
    %11 = vector.extract_strided_slice %2 {offsets = [0, 16], sizes = [64, 16], strides = [1, 1]} : vector<64x64xf32> to vector<64x16xf32>
    %12 = vector.extract_strided_slice %3 {offsets = [0, 1], sizes = [64, 1], strides = [1, 1]} : vector<64x4xf32> to vector<64x1xf32>
    %13 = vector.broadcast %12 : vector<64x1xf32> to vector<64x16xf32>
    %14 = arith.mulf %11, %13 : vector<64x16xf32>
    %15 = arith.addf %10, %14 : vector<64x16xf32>
    %16 = vector.extract_strided_slice %2 {offsets = [0, 32], sizes = [64, 16], strides = [1, 1]} : vector<64x64xf32> to vector<64x16xf32>
    %17 = vector.extract_strided_slice %3 {offsets = [0, 2], sizes = [64, 1], strides = [1, 1]} : vector<64x4xf32> to vector<64x1xf32>
    %18 = vector.broadcast %17 : vector<64x1xf32> to vector<64x16xf32>
    %19 = arith.mulf %16, %18 : vector<64x16xf32>
    %20 = arith.addf %15, %19 : vector<64x16xf32>
    %21 = vector.extract_strided_slice %2 {offsets = [0, 48], sizes = [64, 16], strides = [1, 1]} : vector<64x64xf32> to vector<64x16xf32>
    %22 = vector.extract_strided_slice %3 {offsets = [0, 3], sizes = [64, 1], strides = [1, 1]} : vector<64x4xf32> to vector<64x1xf32>
    %23 = vector.broadcast %22 : vector<64x1xf32> to vector<64x16xf32>
    %24 = arith.mulf %21, %23 : vector<64x16xf32>
    %25 = arith.addf %20, %24 : vector<64x16xf32>
    %cst_7 = arith.constant 0.000000e+00 : f32
    %26 = vector.broadcast %cst_7 : f32 to vector<64x16xf32>
    %27 = arith.maximumf %25, %26 : vector<64x16xf32>
    %c0_8 = arith.constant 0 : index
    %c0_9 = arith.constant 0 : index
    %28 = vector.load %arg5[%c0_8, %c0_9] : memref<64x16xf32, #tpu.memory_space<vmem>>, vector<64x16xf32>
    tpu.vector_store %arg5[%c0_8, %c0_9], %27 {strides = array<i32>} : memref<64x16xf32, #tpu.memory_space<vmem>>, vector<64x16xf32>,
    return
  }
  func.func @transform_0(%arg0: i32) -> (i32, i32) {
    %c0_i32 = arith.constant 0 : i32
    %c0_i32_0 = arith.constant 0 : i32
    return %arg0, %c0_i32 : i32, i32
  }
  func.func @transform_1(%arg0: i32) -> (i32, i32) {
    %c0_i32 = arith.constant 0 : i32
    %c0_i32_0 = arith.constant 0 : i32
    return %arg0, %c0_i32 : i32, i32
  }
  func.func @transform_2(%arg0: i32) -> (i32, i32) {
    %c0_i32 = arith.constant 0 : i32
    %c0_i32_0 = arith.constant 0 : i32
    %c0_i32_1 = arith.constant 0 : i32
    return %c0_i32, %c0_i32_0 : i32, i32
  }
  func.func @transform_3(%arg0: i32) -> (i32, i32) {
    %c0_i32 = arith.constant 0 : i32
    %c0_i32_0 = arith.constant 0 : i32
    %c0_i32_1 = arith.constant 0 : i32
    return %c0_i32, %c0_i32_0 : i32, i32
  }
  func.func @transform_4(%arg0: i32) -> (i32, i32) {
    %c0_i32 = arith.constant 0 : i32
    %c0_i32_0 = arith.constant 0 : i32
    return %arg0, %c0_i32 : i32, i32
  }
}

module attributes {stable_mosaic.version = 11 : i64} {
  func.func @_switched_conv_kernel(%arg0: i32, %arg1: memref<16x400xbf16, #tpu.memory_space<vmem>>, %arg2: memref<16x4xf32, #tpu.memory_space<vmem>>, %arg3: memref<400x128xbf16, #tpu.memory_space<vmem>>, %arg4: memref<1x32xf32, #tpu.memory_space<vmem>>, %arg5: memref<16x32xf32, #tpu.memory_space<vmem>>) attributes {dimension_semantics = [#tpu.dimension_semantics<parallel>], iteration_bounds = array<i64: 2>, scalar_prefetch = 0 : i64, scratch_operands = 0 : i64, tpu.core_type = #tpu.core_type<tc>, window_params = [{transform_indices = @transform_0, window_bounds = array<i64: 16, 400>}, {transform_indices = @transform_1, window_bounds = array<i64: 16, 4>}, {pipeline_mode = #tpu.pipeline_mode<synchronous>, transform_indices = @transform_2, window_bounds = array<i64: 400, 128>}, {pipeline_mode = #tpu.pipeline_mode<synchronous>, transform_indices = @transform_3, window_bounds = array<i64: 1, 32>}, {transform_indices = @transform_4, window_bounds = array<i64: 16, 32>}]} {
    %c0 = arith.constant 0 : index
    %c0_0 = arith.constant 0 : index
    %0 = vector.load %arg1[%c0, %c0_0] : memref<16x400xbf16, #tpu.memory_space<vmem>>, vector<16x400xbf16>
    %c0_1 = arith.constant 0 : index
    %c0_2 = arith.constant 0 : index
    %1 = vector.load %arg3[%c0_1, %c0_2] : memref<400x128xbf16, #tpu.memory_space<vmem>>, vector<400x128xbf16>
    %cst = arith.constant dense<0.000000e+00> : vector<16x128xf32>
    %2 = tpu.matmul %0, %1, %cst {dimension_numbers = #tpu.dot_dimension_numbers<[1], [0], [0], [1], [0, 0, 1, 1], [], []>} : vector<16x400xbf16>, vector<400x128xbf16>, vector<16x128xf32> -> vector<16x128xf32>
    %c0_3 = arith.constant 0 : index
    %c0_4 = arith.constant 0 : index
    %3 = vector.load %arg2[%c0_3, %c0_4] : memref<16x4xf32, #tpu.memory_space<vmem>>, vector<16x4xf32>
    %c0_5 = arith.constant 0 : index
    %c0_6 = arith.constant 0 : index
    %4 = vector.load %arg4[%c0_5, %c0_6] : memref<1x32xf32, #tpu.memory_space<vmem>>, vector<1x32xf32>
    %5 = vector.extract_strided_slice %2 {offsets = [0, 0], sizes = [16, 32], strides = [1, 1]} : vector<16x128xf32> to vector<16x32xf32>
    %6 = vector.extract_strided_slice %3 {offsets = [0, 0], sizes = [16, 1], strides = [1, 1]} : vector<16x4xf32> to vector<16x1xf32>
    %7 = vector.broadcast %6 : vector<16x1xf32> to vector<16x32xf32>
    %8 = arith.mulf %5, %7 : vector<16x32xf32>
    %9 = vector.broadcast %4 : vector<1x32xf32> to vector<16x32xf32>
    %10 = arith.addf %9, %8 : vector<16x32xf32>
    %11 = vector.extract_strided_slice %2 {offsets = [0, 32], sizes = [16, 32], strides = [1, 1]} : vector<16x128xf32> to vector<16x32xf32>
    %12 = vector.extract_strided_slice %3 {offsets = [0, 1], sizes = [16, 1], strides = [1, 1]} : vector<16x4xf32> to vector<16x1xf32>
    %13 = vector.broadcast %12 : vector<16x1xf32> to vector<16x32xf32>
    %14 = arith.mulf %11, %13 : vector<16x32xf32>
    %15 = arith.addf %10, %14 : vector<16x32xf32>
    %16 = vector.extract_strided_slice %2 {offsets = [0, 64], sizes = [16, 32], strides = [1, 1]} : vector<16x128xf32> to vector<16x32xf32>
    %17 = vector.extract_strided_slice %3 {offsets = [0, 2], sizes = [16, 1], strides = [1, 1]} : vector<16x4xf32> to vector<16x1xf32>
    %18 = vector.broadcast %17 : vector<16x1xf32> to vector<16x32xf32>
    %19 = arith.mulf %16, %18 : vector<16x32xf32>
    %20 = arith.addf %15, %19 : vector<16x32xf32>
    %21 = vector.extract_strided_slice %2 {offsets = [0, 96], sizes = [16, 32], strides = [1, 1]} : vector<16x128xf32> to vector<16x32xf32>
    %22 = vector.extract_strided_slice %3 {offsets = [0, 3], sizes = [16, 1], strides = [1, 1]} : vector<16x4xf32> to vector<16x1xf32>
    %23 = vector.broadcast %22 : vector<16x1xf32> to vector<16x32xf32>
    %24 = arith.mulf %21, %23 : vector<16x32xf32>
    %25 = arith.addf %20, %24 : vector<16x32xf32>
    %cst_7 = arith.constant 0.000000e+00 : f32
    %26 = vector.broadcast %cst_7 : f32 to vector<16x32xf32>
    %27 = arith.maximumf %25, %26 : vector<16x32xf32>
    %c0_8 = arith.constant 0 : index
    %c0_9 = arith.constant 0 : index
    %28 = vector.load %arg5[%c0_8, %c0_9] : memref<16x32xf32, #tpu.memory_space<vmem>>, vector<16x32xf32>
    tpu.vector_store %arg5[%c0_8, %c0_9], %27 {strides = array<i32>} : memref<16x32xf32, #tpu.memory_space<vmem>>, vector<16x32xf32>,
    return
  }
  func.func @transform_0(%arg0: i32) -> (i32, i32) {
    %c0_i32 = arith.constant 0 : i32
    %c0_i32_0 = arith.constant 0 : i32
    return %arg0, %c0_i32 : i32, i32
  }
  func.func @transform_1(%arg0: i32) -> (i32, i32) {
    %c0_i32 = arith.constant 0 : i32
    %c0_i32_0 = arith.constant 0 : i32
    return %arg0, %c0_i32 : i32, i32
  }
  func.func @transform_2(%arg0: i32) -> (i32, i32) {
    %c0_i32 = arith.constant 0 : i32
    %c0_i32_0 = arith.constant 0 : i32
    %c0_i32_1 = arith.constant 0 : i32
    return %c0_i32, %c0_i32_0 : i32, i32
  }
  func.func @transform_3(%arg0: i32) -> (i32, i32) {
    %c0_i32 = arith.constant 0 : i32
    %c0_i32_0 = arith.constant 0 : i32
    %c0_i32_1 = arith.constant 0 : i32
    return %c0_i32, %c0_i32_0 : i32, i32
  }
  func.func @transform_4(%arg0: i32) -> (i32, i32) {
    %c0_i32 = arith.constant 0 : i32
    %c0_i32_0 = arith.constant 0 : i32
    return %arg0, %c0_i32 : i32, i32
  }
}

module attributes {stable_mosaic.version = 11 : i64} {
  func.func @_switched_conv_kernel(%arg0: i32, %arg1: memref<16x288xbf16, #tpu.memory_space<vmem>>, %arg2: memref<16x4xf32, #tpu.memory_space<vmem>>, %arg3: memref<288x128xbf16, #tpu.memory_space<vmem>>, %arg4: memref<1x32xf32, #tpu.memory_space<vmem>>, %arg5: memref<16x32xf32, #tpu.memory_space<vmem>>) attributes {dimension_semantics = [#tpu.dimension_semantics<parallel>], iteration_bounds = array<i64: 2>, scalar_prefetch = 0 : i64, scratch_operands = 0 : i64, tpu.core_type = #tpu.core_type<tc>, window_params = [{transform_indices = @transform_0, window_bounds = array<i64: 16, 288>}, {transform_indices = @transform_1, window_bounds = array<i64: 16, 4>}, {pipeline_mode = #tpu.pipeline_mode<synchronous>, transform_indices = @transform_2, window_bounds = array<i64: 288, 128>}, {pipeline_mode = #tpu.pipeline_mode<synchronous>, transform_indices = @transform_3, window_bounds = array<i64: 1, 32>}, {transform_indices = @transform_4, window_bounds = array<i64: 16, 32>}]} {
    %c0 = arith.constant 0 : index
    %c0_0 = arith.constant 0 : index
    %0 = vector.load %arg1[%c0, %c0_0] : memref<16x288xbf16, #tpu.memory_space<vmem>>, vector<16x288xbf16>
    %c0_1 = arith.constant 0 : index
    %c0_2 = arith.constant 0 : index
    %1 = vector.load %arg3[%c0_1, %c0_2] : memref<288x128xbf16, #tpu.memory_space<vmem>>, vector<288x128xbf16>
    %cst = arith.constant dense<0.000000e+00> : vector<16x128xf32>
    %2 = tpu.matmul %0, %1, %cst {dimension_numbers = #tpu.dot_dimension_numbers<[1], [0], [0], [1], [0, 0, 1, 1], [], []>} : vector<16x288xbf16>, vector<288x128xbf16>, vector<16x128xf32> -> vector<16x128xf32>
    %c0_3 = arith.constant 0 : index
    %c0_4 = arith.constant 0 : index
    %3 = vector.load %arg2[%c0_3, %c0_4] : memref<16x4xf32, #tpu.memory_space<vmem>>, vector<16x4xf32>
    %c0_5 = arith.constant 0 : index
    %c0_6 = arith.constant 0 : index
    %4 = vector.load %arg4[%c0_5, %c0_6] : memref<1x32xf32, #tpu.memory_space<vmem>>, vector<1x32xf32>
    %5 = vector.extract_strided_slice %2 {offsets = [0, 0], sizes = [16, 32], strides = [1, 1]} : vector<16x128xf32> to vector<16x32xf32>
    %6 = vector.extract_strided_slice %3 {offsets = [0, 0], sizes = [16, 1], strides = [1, 1]} : vector<16x4xf32> to vector<16x1xf32>
    %7 = vector.broadcast %6 : vector<16x1xf32> to vector<16x32xf32>
    %8 = arith.mulf %5, %7 : vector<16x32xf32>
    %9 = vector.broadcast %4 : vector<1x32xf32> to vector<16x32xf32>
    %10 = arith.addf %9, %8 : vector<16x32xf32>
    %11 = vector.extract_strided_slice %2 {offsets = [0, 32], sizes = [16, 32], strides = [1, 1]} : vector<16x128xf32> to vector<16x32xf32>
    %12 = vector.extract_strided_slice %3 {offsets = [0, 1], sizes = [16, 1], strides = [1, 1]} : vector<16x4xf32> to vector<16x1xf32>
    %13 = vector.broadcast %12 : vector<16x1xf32> to vector<16x32xf32>
    %14 = arith.mulf %11, %13 : vector<16x32xf32>
    %15 = arith.addf %10, %14 : vector<16x32xf32>
    %16 = vector.extract_strided_slice %2 {offsets = [0, 64], sizes = [16, 32], strides = [1, 1]} : vector<16x128xf32> to vector<16x32xf32>
    %17 = vector.extract_strided_slice %3 {offsets = [0, 2], sizes = [16, 1], strides = [1, 1]} : vector<16x4xf32> to vector<16x1xf32>
    %18 = vector.broadcast %17 : vector<16x1xf32> to vector<16x32xf32>
    %19 = arith.mulf %16, %18 : vector<16x32xf32>
    %20 = arith.addf %15, %19 : vector<16x32xf32>
    %21 = vector.extract_strided_slice %2 {offsets = [0, 96], sizes = [16, 32], strides = [1, 1]} : vector<16x128xf32> to vector<16x32xf32>
    %22 = vector.extract_strided_slice %3 {offsets = [0, 3], sizes = [16, 1], strides = [1, 1]} : vector<16x4xf32> to vector<16x1xf32>
    %23 = vector.broadcast %22 : vector<16x1xf32> to vector<16x32xf32>
    %24 = arith.mulf %21, %23 : vector<16x32xf32>
    %25 = arith.addf %20, %24 : vector<16x32xf32>
    %c0_7 = arith.constant 0 : index
    %c0_8 = arith.constant 0 : index
    %26 = vector.load %arg5[%c0_7, %c0_8] : memref<16x32xf32, #tpu.memory_space<vmem>>, vector<16x32xf32>
    tpu.vector_store %arg5[%c0_7, %c0_8], %25 {strides = array<i32>} : memref<16x32xf32, #tpu.memory_space<vmem>>, vector<16x32xf32>,
    return
  }
  func.func @transform_0(%arg0: i32) -> (i32, i32) {
    %c0_i32 = arith.constant 0 : i32
    %c0_i32_0 = arith.constant 0 : i32
    return %arg0, %c0_i32 : i32, i32
  }
  func.func @transform_1(%arg0: i32) -> (i32, i32) {
    %c0_i32 = arith.constant 0 : i32
    %c0_i32_0 = arith.constant 0 : i32
    return %arg0, %c0_i32 : i32, i32
  }
  func.func @transform_2(%arg0: i32) -> (i32, i32) {
    %c0_i32 = arith.constant 0 : i32
    %c0_i32_0 = arith.constant 0 : i32
    %c0_i32_1 = arith.constant 0 : i32
    return %c0_i32, %c0_i32_0 : i32, i32
  }
  func.func @transform_3(%arg0: i32) -> (i32, i32) {
    %c0_i32 = arith.constant 0 : i32
    %c0_i32_0 = arith.constant 0 : i32
    %c0_i32_1 = arith.constant 0 : i32
    return %c0_i32, %c0_i32_0 : i32, i32
  }
  func.func @transform_4(%arg0: i32) -> (i32, i32) {
    %c0_i32 = arith.constant 0 : i32
    %c0_i32_0 = arith.constant 0 : i32
    return %arg0, %c0_i32 : i32, i32
  }
}

module attributes {stable_mosaic.version = 11 : i64} {
  func.func @_switched_conv_kernel(%arg0: i32, %arg1: memref<16x288xbf16, #tpu.memory_space<vmem>>, %arg2: memref<16x4xf32, #tpu.memory_space<vmem>>, %arg3: memref<288x64xbf16, #tpu.memory_space<vmem>>, %arg4: memref<1x16xf32, #tpu.memory_space<vmem>>, %arg5: memref<16x16xf32, #tpu.memory_space<vmem>>) attributes {dimension_semantics = [#tpu.dimension_semantics<parallel>], iteration_bounds = array<i64: 2>, scalar_prefetch = 0 : i64, scratch_operands = 0 : i64, tpu.core_type = #tpu.core_type<tc>, window_params = [{transform_indices = @transform_0, window_bounds = array<i64: 16, 288>}, {transform_indices = @transform_1, window_bounds = array<i64: 16, 4>}, {pipeline_mode = #tpu.pipeline_mode<synchronous>, transform_indices = @transform_2, window_bounds = array<i64: 288, 64>}, {pipeline_mode = #tpu.pipeline_mode<synchronous>, transform_indices = @transform_3, window_bounds = array<i64: 1, 16>}, {transform_indices = @transform_4, window_bounds = array<i64: 16, 16>}]} {
    %c0 = arith.constant 0 : index
    %c0_0 = arith.constant 0 : index
    %0 = vector.load %arg1[%c0, %c0_0] : memref<16x288xbf16, #tpu.memory_space<vmem>>, vector<16x288xbf16>
    %c0_1 = arith.constant 0 : index
    %c0_2 = arith.constant 0 : index
    %1 = vector.load %arg3[%c0_1, %c0_2] : memref<288x64xbf16, #tpu.memory_space<vmem>>, vector<288x64xbf16>
    %cst = arith.constant dense<0.000000e+00> : vector<16x64xf32>
    %2 = tpu.matmul %0, %1, %cst {dimension_numbers = #tpu.dot_dimension_numbers<[1], [0], [0], [1], [0, 0, 1, 1], [], []>} : vector<16x288xbf16>, vector<288x64xbf16>, vector<16x64xf32> -> vector<16x64xf32>
    %c0_3 = arith.constant 0 : index
    %c0_4 = arith.constant 0 : index
    %3 = vector.load %arg2[%c0_3, %c0_4] : memref<16x4xf32, #tpu.memory_space<vmem>>, vector<16x4xf32>
    %c0_5 = arith.constant 0 : index
    %c0_6 = arith.constant 0 : index
    %4 = vector.load %arg4[%c0_5, %c0_6] : memref<1x16xf32, #tpu.memory_space<vmem>>, vector<1x16xf32>
    %5 = vector.extract_strided_slice %2 {offsets = [0, 0], sizes = [16, 16], strides = [1, 1]} : vector<16x64xf32> to vector<16x16xf32>
    %6 = vector.extract_strided_slice %3 {offsets = [0, 0], sizes = [16, 1], strides = [1, 1]} : vector<16x4xf32> to vector<16x1xf32>
    %7 = vector.broadcast %6 : vector<16x1xf32> to vector<16x16xf32>
    %8 = arith.mulf %5, %7 : vector<16x16xf32>
    %9 = vector.broadcast %4 : vector<1x16xf32> to vector<16x16xf32>
    %10 = arith.addf %9, %8 : vector<16x16xf32>
    %11 = vector.extract_strided_slice %2 {offsets = [0, 16], sizes = [16, 16], strides = [1, 1]} : vector<16x64xf32> to vector<16x16xf32>
    %12 = vector.extract_strided_slice %3 {offsets = [0, 1], sizes = [16, 1], strides = [1, 1]} : vector<16x4xf32> to vector<16x1xf32>
    %13 = vector.broadcast %12 : vector<16x1xf32> to vector<16x16xf32>
    %14 = arith.mulf %11, %13 : vector<16x16xf32>
    %15 = arith.addf %10, %14 : vector<16x16xf32>
    %16 = vector.extract_strided_slice %2 {offsets = [0, 32], sizes = [16, 16], strides = [1, 1]} : vector<16x64xf32> to vector<16x16xf32>
    %17 = vector.extract_strided_slice %3 {offsets = [0, 2], sizes = [16, 1], strides = [1, 1]} : vector<16x4xf32> to vector<16x1xf32>
    %18 = vector.broadcast %17 : vector<16x1xf32> to vector<16x16xf32>
    %19 = arith.mulf %16, %18 : vector<16x16xf32>
    %20 = arith.addf %15, %19 : vector<16x16xf32>
    %21 = vector.extract_strided_slice %2 {offsets = [0, 48], sizes = [16, 16], strides = [1, 1]} : vector<16x64xf32> to vector<16x16xf32>
    %22 = vector.extract_strided_slice %3 {offsets = [0, 3], sizes = [16, 1], strides = [1, 1]} : vector<16x4xf32> to vector<16x1xf32>
    %23 = vector.broadcast %22 : vector<16x1xf32> to vector<16x16xf32>
    %24 = arith.mulf %21, %23 : vector<16x16xf32>
    %25 = arith.addf %20, %24 : vector<16x16xf32>
    %cst_7 = arith.constant 0.000000e+00 : f32
    %26 = vector.broadcast %cst_7 : f32 to vector<16x16xf32>
    %27 = arith.maximumf %25, %26 : vector<16x16xf32>
    %c0_8 = arith.constant 0 : index
    %c0_9 = arith.constant 0 : index
    %28 = vector.load %arg5[%c0_8, %c0_9] : memref<16x16xf32, #tpu.memory_space<vmem>>, vector<16x16xf32>
    tpu.vector_store %arg5[%c0_8, %c0_9], %27 {strides = array<i32>} : memref<16x16xf32, #tpu.memory_space<vmem>>, vector<16x16xf32>,
    return
  }
  func.func @transform_0(%arg0: i32) -> (i32, i32) {
    %c0_i32 = arith.constant 0 : i32
    %c0_i32_0 = arith.constant 0 : i32
    return %arg0, %c0_i32 : i32, i32
  }
  func.func @transform_1(%arg0: i32) -> (i32, i32) {
    %c0_i32 = arith.constant 0 : i32
    %c0_i32_0 = arith.constant 0 : i32
    return %arg0, %c0_i32 : i32, i32
  }
  func.func @transform_2(%arg0: i32) -> (i32, i32) {
    %c0_i32 = arith.constant 0 : i32
    %c0_i32_0 = arith.constant 0 : i32
    %c0_i32_1 = arith.constant 0 : i32
    return %c0_i32, %c0_i32_0 : i32, i32
  }
  func.func @transform_3(%arg0: i32) -> (i32, i32) {
    %c0_i32 = arith.constant 0 : i32
    %c0_i32_0 = arith.constant 0 : i32
    %c0_i32_1 = arith.constant 0 : i32
    return %c0_i32, %c0_i32_0 : i32, i32
  }
  func.func @transform_4(%arg0: i32) -> (i32, i32) {
    %c0_i32 = arith.constant 0 : i32
    %c0_i32_0 = arith.constant 0 : i32
    return %arg0, %c0_i32 : i32, i32
  }
}

module attributes {stable_mosaic.version = 11 : i64} {
  func.func @_switched_conv_kernel(%arg0: i32, %arg1: memref<16x16xbf16, #tpu.memory_space<vmem>>, %arg2: memref<16x4xf32, #tpu.memory_space<vmem>>, %arg3: memref<16x128xbf16, #tpu.memory_space<vmem>>, %arg4: memref<1x32xf32, #tpu.memory_space<vmem>>, %arg5: memref<16x32xf32, #tpu.memory_space<vmem>>) attributes {dimension_semantics = [#tpu.dimension_semantics<parallel>], iteration_bounds = array<i64: 2>, scalar_prefetch = 0 : i64, scratch_operands = 0 : i64, tpu.core_type = #tpu.core_type<tc>, window_params = [{transform_indices = @transform_0, window_bounds = array<i64: 16, 16>}, {transform_indices = @transform_1, window_bounds = array<i64: 16, 4>}, {pipeline_mode = #tpu.pipeline_mode<synchronous>, transform_indices = @transform_2, window_bounds = array<i64: 16, 128>}, {pipeline_mode = #tpu.pipeline_mode<synchronous>, transform_indices = @transform_3, window_bounds = array<i64: 1, 32>}, {transform_indices = @transform_4, window_bounds = array<i64: 16, 32>}]} {
    %c0 = arith.constant 0 : index
    %c0_0 = arith.constant 0 : index
    %0 = vector.load %arg1[%c0, %c0_0] : memref<16x16xbf16, #tpu.memory_space<vmem>>, vector<16x16xbf16>
    %c0_1 = arith.constant 0 : index
    %c0_2 = arith.constant 0 : index
    %1 = vector.load %arg3[%c0_1, %c0_2] : memref<16x128xbf16, #tpu.memory_space<vmem>>, vector<16x128xbf16>
    %cst = arith.constant dense<0.000000e+00> : vector<16x128xf32>
    %2 = tpu.matmul %0, %1, %cst {dimension_numbers = #tpu.dot_dimension_numbers<[1], [0], [0], [1], [0, 0, 1, 1], [], []>} : vector<16x16xbf16>, vector<16x128xbf16>, vector<16x128xf32> -> vector<16x128xf32>
    %c0_3 = arith.constant 0 : index
    %c0_4 = arith.constant 0 : index
    %3 = vector.load %arg2[%c0_3, %c0_4] : memref<16x4xf32, #tpu.memory_space<vmem>>, vector<16x4xf32>
    %c0_5 = arith.constant 0 : index
    %c0_6 = arith.constant 0 : index
    %4 = vector.load %arg4[%c0_5, %c0_6] : memref<1x32xf32, #tpu.memory_space<vmem>>, vector<1x32xf32>
    %5 = vector.extract_strided_slice %2 {offsets = [0, 0], sizes = [16, 32], strides = [1, 1]} : vector<16x128xf32> to vector<16x32xf32>
    %6 = vector.extract_strided_slice %3 {offsets = [0, 0], sizes = [16, 1], strides = [1, 1]} : vector<16x4xf32> to vector<16x1xf32>
    %7 = vector.broadcast %6 : vector<16x1xf32> to vector<16x32xf32>
    %8 = arith.mulf %5, %7 : vector<16x32xf32>
    %9 = vector.broadcast %4 : vector<1x32xf32> to vector<16x32xf32>
    %10 = arith.addf %9, %8 : vector<16x32xf32>
    %11 = vector.extract_strided_slice %2 {offsets = [0, 32], sizes = [16, 32], strides = [1, 1]} : vector<16x128xf32> to vector<16x32xf32>
    %12 = vector.extract_strided_slice %3 {offsets = [0, 1], sizes = [16, 1], strides = [1, 1]} : vector<16x4xf32> to vector<16x1xf32>
    %13 = vector.broadcast %12 : vector<16x1xf32> to vector<16x32xf32>
    %14 = arith.mulf %11, %13 : vector<16x32xf32>
    %15 = arith.addf %10, %14 : vector<16x32xf32>
    %16 = vector.extract_strided_slice %2 {offsets = [0, 64], sizes = [16, 32], strides = [1, 1]} : vector<16x128xf32> to vector<16x32xf32>
    %17 = vector.extract_strided_slice %3 {offsets = [0, 2], sizes = [16, 1], strides = [1, 1]} : vector<16x4xf32> to vector<16x1xf32>
    %18 = vector.broadcast %17 : vector<16x1xf32> to vector<16x32xf32>
    %19 = arith.mulf %16, %18 : vector<16x32xf32>
    %20 = arith.addf %15, %19 : vector<16x32xf32>
    %21 = vector.extract_strided_slice %2 {offsets = [0, 96], sizes = [16, 32], strides = [1, 1]} : vector<16x128xf32> to vector<16x32xf32>
    %22 = vector.extract_strided_slice %3 {offsets = [0, 3], sizes = [16, 1], strides = [1, 1]} : vector<16x4xf32> to vector<16x1xf32>
    %23 = vector.broadcast %22 : vector<16x1xf32> to vector<16x32xf32>
    %24 = arith.mulf %21, %23 : vector<16x32xf32>
    %25 = arith.addf %20, %24 : vector<16x32xf32>
    %c0_7 = arith.constant 0 : index
    %c0_8 = arith.constant 0 : index
    %26 = vector.load %arg5[%c0_7, %c0_8] : memref<16x32xf32, #tpu.memory_space<vmem>>, vector<16x32xf32>
    tpu.vector_store %arg5[%c0_7, %c0_8], %25 {strides = array<i32>} : memref<16x32xf32, #tpu.memory_space<vmem>>, vector<16x32xf32>,
    return
  }
  func.func @transform_0(%arg0: i32) -> (i32, i32) {
    %c0_i32 = arith.constant 0 : i32
    %c0_i32_0 = arith.constant 0 : i32
    return %arg0, %c0_i32 : i32, i32
  }
  func.func @transform_1(%arg0: i32) -> (i32, i32) {
    %c0_i32 = arith.constant 0 : i32
    %c0_i32_0 = arith.constant 0 : i32
    return %arg0, %c0_i32 : i32, i32
  }
  func.func @transform_2(%arg0: i32) -> (i32, i32) {
    %c0_i32 = arith.constant 0 : i32
    %c0_i32_0 = arith.constant 0 : i32
    %c0_i32_1 = arith.constant 0 : i32
    return %c0_i32, %c0_i32_0 : i32, i32
  }
  func.func @transform_3(%arg0: i32) -> (i32, i32) {
    %c0_i32 = arith.constant 0 : i32
    %c0_i32_0 = arith.constant 0 : i32
    %c0_i32_1 = arith.constant 0 : i32
    return %c0_i32, %c0_i32_0 : i32, i32
  }
  func.func @transform_4(%arg0: i32) -> (i32, i32) {
    %c0_i32 = arith.constant 0 : i32
    %c0_i32_0 = arith.constant 0 : i32
    return %arg0, %c0_i32 : i32, i32
  }
}

</mosaic_0001>

<bundles_post_ra>
// kernel: _lambda_.7
= control target key start
LH: loop header
LB: loop body
LE: loop exit
PB: predicated region body
PF: predicated region fallthrough
CT: control target
= control target key end

     0   :  { %s899_s15 = smov 0   ;;  %s1091_s0 = inlined_call_operand.vmem [shape: bf16[128,100], index: 0, kind: input, shape index: {}]   ;;  %s1092_s1 = inlined_call_operand.vmem [shape: f32[128,4], index: 1, kind: input, shape index: {}]   ;;  %s1093_s2 = inlined_call_operand.vmem [shape: bf16[100,64], index: 2, kind: input, shape index: {}]   ;;  %s1094_s3 = inlined_call_operand.vmem [shape: f32[1,16], index: 3, kind: input, shape index: {}]   ;;  %s1095_s4 = inlined_call_operand.vmem [shape: f32[128,16], index: 4, kind: output, shape index: {}]  }
   0x1 LB: > { %s743_s16 = sadd.s32 4294967295, %s865_s15   ;;  %p747_p0 = scmp.ge.s32.totalorder %s865_s15, 1  ;;  %s865_s15 = sphi %s899_s15, %s14_s15  }
   0x2   : > { %p174_p1 = scmp.lt.s32.totalorder %s865_s15, 3 }
   0x4   : > { %p175_p2 = pnand %p747_p0, %p174_p1 }
   0x5   : > { %s748_s19 = sshll.u32 (!%p175_p2), %s743_s16, 3  ;;  %s871_s14 = smov (!%p175_p2), 112  }
   0x6   : > { %178 = sbr.rel (%p175_p2) target bundleno = 367 (0x16f), region = 36  ;;  %p206_p3 = scmp.lt.s32.totalorder (!%p175_p2), %s748_s19, 15 }
   0x7   : > { %s872_s16 = smov (!%p175_p2), 96   ;;  %s873_s17 = smov (!%p175_p2), 80  }
   0xb   : > { %v244_v0 = vld [vmem:[%s1093_s2 + $0x30] sm:$0x3]  ;;  %v867_v2 = vmov 0   ;;  %vm317_vm0 = vcmask 1041408   ;;  %s1097_s19 = smov (!%p206_p3, %s748_s19), 15  ;;  %v809_v5 = vld [vmem:[%s1093_s2 + $0x28] sm:$0xff] }
   0xc   : > { %v290_v1 = vunpack.c.l.b16 %v244_v0  ;;  %847 = vset.pattern.permute.xlu1 %v867_v2  ;;  %846 = vset.pattern.permute.xlu0 %v867_v2  ;;  %s751_s20 = sshll.u32 %s1097_s19, 3  ;;  %v808_v9 = vld [vmem:[%s1093_s2 + $0x20] sm:$0xff]  ;;  %v807_v12 = vld [vmem:[%s1093_s2 + $0x18] sm:$0xff]  ;;  %v806_v14 = vld [vmem:[%s1093_s2 + $0x10] sm:$0xff]  ;;  %s749_s8 = sshll.u32 %s1097_s19, 2  ;;  %v868_v18 = vmov 1  }
   0xd   : > { %848 = vset.pattern.permute.xlu2 %v867_v2  ;;  %s918_s23 = scalar_lea.vmem %s1092_s1, %s751_s20  ;;  %v805_v17 = vld [vmem:[%s1093_s2 + $0x8] sm:$0xff]  ;;  %v804_v19 = vld [vmem:[%s1093_s2] sm:$0xff]  ;;  %s209_s13 = scalar_lea.vmem %s1091_s0, %s749_s8  ;;  %vm304_vm1 = vcmask 818176   ;;  %v869_v24 = vmov 2   ;;  %v870_v25 = vmov 3   ;;  %vm666_vm2 = vcmask 130048  }
   0xe   : > { %v297_v3 = vpack.c.b16 %v290_v1, %v290_v1  ;;  %v924_v6 = vld [vmem:[%s918_s23 + $0x10] sm:$0xff]  ;;  %v927_v7 = vld [vmem:[%s918_s23] sm:$0xff]  ;;  %v939_v10 = vld [vmem:[%s918_s23 + $0x18] sm:$0xff]  ;;  %s1059_s24 = scalar_lea.vmem %s1095_s4, %s751_s20 }
   0xf   : > { %v930_v8 = vld [vmem:[%s918_s23 + $0x20] sm:$0xff]  ;;  %371 = vperm.xlu1 %847, %v924_v6   ;;  %361 = vperm.xlu0 %846, %v927_v7   ;;  %v942_v11 = vld [vmem:[%s918_s23 + $0x8] sm:$0xff]  ;;  %v957_v15 = vld [vmem:[%s918_s23 + $0x38] sm:$0xff] }
  0x10   : > { %v319_v4 = vsel %vm317_vm0, %v297_v3, 0  ;;  %381 = vperm.xlu2 %848, %v930_v8   ;;  %v948_v13 = vld [vmem:[%s918_s23 + $0x28] sm:$0xff]  ;;  %v356_v16 = vld [vmem:[%s918_s23 + $0x30] sm:$0xff]  ;;  %v800_v20 = vld [vmem:[%s209_s13] sm:$0xff] }
  0x11   : > { %322 = vmatpush.bf16.msra.mxu0 %v319_v4  ;;  %810 = vmatpush.bf16.msra.mxu1 %v319_v4  ;;  %v801_v21 = vld [vmem:[%s209_s13 + $0x8] sm:$0xff]  ;;  %v802_v22 = vld [vmem:[%s209_s13 + $0x10] sm:$0xff]  ;;  %v803_v23 = vld [vmem:[%s209_s13 + $0x18] sm:$0xff] }
  0x12   : > { %811 = vmatpush.bf16.msra.mxu2 %v319_v4  ;;  %812 = vmatpush.bf16.msra.mxu3 %v319_v4 }
  0x15   : > { %323 = vmatpush.bf16.msra.mxu0 %v809_v5  ;;  %813 = vmatpush.bf16.msra.mxu1 %v809_v5 }
  0x16   : > { %814 = vmatpush.bf16.msra.mxu2 %v809_v5  ;;  %815 = vmatpush.bf16.msra.mxu3 %v809_v5  ;;  %v1021_v5 = vld [vmem:[%s1094_s3] ss:$0 sm:$0xff] }
  0x17   : > { %376 = vperm.xlu1 %847, %v939_v10   ;;  %366 = vperm.xlu0 %846, %v942_v11  }
  0x18   : > { %386 = vperm.xlu2 %848, %v948_v13  }
  0x19   : > { %324 = vmatpush.bf16.msra.mxu0 %v808_v9  ;;  %816 = vmatpush.bf16.msra.mxu1 %v808_v9 }
  0x1a   : > { %817 = vmatpush.bf16.msra.mxu2 %v808_v9  ;;  %818 = vmatpush.bf16.msra.mxu3 %v808_v9 }
  0x1d   : > { %325 = vmatpush.bf16.msra.mxu0 %v807_v12  ;;  %819 = vmatpush.bf16.msra.mxu1 %v807_v12 }
  0x1e   : > { %820 = vmatpush.bf16.msra.mxu2 %v807_v12  ;;  %821 = vmatpush.bf16.msra.mxu3 %v807_v12 }
  0x1f   : > { %396 = vperm.xlu1 %847, %v957_v15   ;;  %391 = vperm.xlu0 %846, %v356_v16  }
  0x20   : > { %849 = vset.pattern.permute.xlu2 %v868_v18 }
  0x21   : > { %326 = vmatpush.bf16.msra.mxu0 %v806_v14  ;;  %822 = vmatpush.bf16.msra.mxu1 %v806_v14 }
  0x22   : > { %823 = vmatpush.bf16.msra.mxu2 %v806_v14  ;;  %824 = vmatpush.bf16.msra.mxu3 %v806_v14 }
  0x23   : > { %419 = vperm.xlu2 %849, %v927_v7  }
  0x25   : > { %327 = vmatpush.bf16.msra.mxu0 %v805_v17  ;;  %825 = vmatpush.bf16.msra.mxu1 %v805_v17 }
  0x26   : > { %826 = vmatpush.bf16.msra.mxu2 %v805_v17  ;;  %827 = vmatpush.bf16.msra.mxu3 %v805_v17 }
  0x27   : > { %851 = vset.pattern.permute.xlu1 %v868_v18  ;;  %850 = vset.pattern.permute.xlu0 %v868_v18 }
  0x28   : > { %427 = vperm.xlu1 %851, %v924_v6   ;;  %423 = vperm.xlu0 %850, %v942_v11  }
  0x29   : > { %328 = vmatpush.bf16.msra.mxu0 %v804_v19  ;;  %828 = vmatpush.bf16.msra.mxu1 %v804_v19 }
  0x2a   : > { %829 = vmatpush.bf16.msra.mxu2 %v804_v19  ;;  %830 = vmatpush.bf16.msra.mxu3 %v804_v19 }
  0x2b   : > { %431 = vperm.xlu2 %849, %v939_v10  }
  0x2c   : > { %794 = vmatmul.msk.bf16.vlgmr.msra.gmra.mxu0 %vm304_vm1, %v800_v20  ;;  %795 = vmatmul.msk.bf16.vlgmr.msra.gmra.mxu1 %vm304_vm1, %v801_v21 }
  0x2d   : > { %796 = vmatmul.msk.bf16.vlgmr.msra.gmra.mxu2 %vm304_vm1, %v802_v22  ;;  %797 = vmatmul.msk.bf16.vlgmr.msra.gmra.mxu3 %vm304_vm1, %v803_v23 }
  0x30   : > { %435 = vperm.xlu1 %851, %v930_v8   ;;  %443 = vperm.xlu0 %850, %v356_v16  }
  0x33   : > { %439 = vperm.xlu2 %849, %v948_v13  }
  0x38   : > { %447 = vperm.xlu1 %851, %v957_v15   ;;  %854 = vset.pattern.permute.xlu0 %v869_v24 }
  0x39   : > { %507 = vperm.xlu0 %854, %v924_v6  }
  0x3b   : > { %853 = vset.pattern.permute.xlu2 %v869_v24 }
  0x3c   : > { %503 = vperm.xlu2 %853, %v942_v11  }
  0x40   : > { %852 = vset.pattern.permute.xlu1 %v869_v24 }
  0x41   : > { %499 = vperm.xlu1 %852, %v927_v7   ;;  %527 = vperm.xlu0 %854, %v957_v15  }
  0x44   : > { %515 = vperm.xlu2 %853, %v930_v8  }
  0x49   : > { %511 = vperm.xlu1 %852, %v939_v10   ;;  %856 = vset.pattern.permute.xlu0 %v870_v25 }
  0x4a   : > { %583 = vperm.xlu0 %856, %v942_v11  }
  0x4c   : > { %523 = vperm.xlu2 %853, %v356_v16  }
  0x51   : > { %519 = vperm.xlu1 %852, %v948_v13  }
  0x52   : > { %603 = vperm.xlu0 %856, %v356_v16  }
  0x54   : > { %855 = vset.pattern.permute.xlu2 %v870_v25 }
  0x55   : > { %579 = vperm.xlu2 %855, %v927_v7  }
  0x59   : > { %857 = vset.pattern.permute.xlu1 %v870_v25 }
  0x5a   : > { %587 = vperm.xlu1 %857, %v924_v6  }
  0x5d   : > { %591 = vperm.xlu2 %855, %v939_v10  }
  0x62   : > { %595 = vperm.xlu1 %857, %v930_v8  }
  0x65   : > { %599 = vperm.xlu2 %855, %v948_v13  }
  0x6a   : > { %607 = vperm.xlu1 %857, %v957_v15   ;;  %v382_v26 = vpop.permute.xlu2 %381 }
  0x72   : > { %v387_v27 = vpop.permute.xlu2 %386 }
  0x7d   : > { %v420_v28 = vpop.permute.xlu2 %419 }
  0x81   : > { %v372_v29 = vpop.permute.xlu1 %371  ;;  %v362_v30 = vpop.permute.xlu0 %361 }
  0x85   : > { %v992_v31 = vpop.permute.xlu2 %431 }
  0x89   : > { %v377_v32 = vpop.permute.xlu1 %376  ;;  %v367_v33 = vpop.permute.xlu0 %366 }
  0x8d   : > { %v994_v34 = vpop.permute.xlu2 %439 }
  0x91   : > { %v397_v35 = vpop.permute.xlu1 %396  ;;  %v392_v36 = vpop.permute.xlu0 %391 }
  0x96   : > { %v996_v37 = vpop.permute.xlu2 %503 }
  0x9a   : > { %v428_v38 = vpop.permute.xlu1 %427  ;;  %v424_v39 = vpop.permute.xlu0 %423 }
  0x9e   : > { %v998_v40 = vpop.permute.xlu2 %515 }
  0xa2   : > { %v436_v41 = vpop.permute.xlu1 %435  ;;  %v444_v42 = vpop.permute.xlu0 %443 }
  0xa6   : > { %v524_v47 = vpop.permute.xlu2 %523 }
  0xa9   : > { %v330_v43 = vpop.f32.mrf.mxu0  ;;  %v335_v44 = vpop.f32.mrf.mxu1 }
  0xaa   : > { %v452_v45 = vmul.f32 %v428_v38, %v335_v44  ;;  %v450_v46 = vmul.f32 %v420_v28, %v330_v43  ;;  %v1000_v48 = vmul.f32 %v362_v30, %v330_v43  ;;  %v1002_v49 = vmul.f32 %v372_v29, %v335_v44  ;;  %v448_v50 = vpop.permute.xlu1 %447 }
  0xab   : > { %v508_v51 = vpop.permute.xlu0 %507 }
  0xac   : > { %470 = vrot.lane.b32.xlu1 %v452_v45, %s871_s14  ;;  %466 = vrot.lane.b32.xlu2 %v450_v46, %s871_s14  ;;  %v532_v52 = vmul.f32 %v508_v51, %v335_v44 }
  0xae   : > { %550 = vrot.lane.b32.xlu0 %v532_v52, %s872_s16 }
  0xaf   : > { %v580_v59 = vpop.permute.xlu2 %579 }
  0xb0   : > { %v340_v53 = vpop.f32.mrf.mxu2  ;;  %v345_v54 = vpop.f32.mrf.mxu3  ;;  %v610_v62 = vmul.f32 %v580_v59, %v330_v43 }
  0xb1   : > { %v332_v55 = vpop.f32.mrf.mxu0  ;;  %v337_v56 = vpop.f32.mrf.mxu1  ;;  %v1011_v60 = vmul.f32 %v382_v26, %v340_v53  ;;  %v1013_v61 = vmul.f32 %v392_v36, %v345_v54  ;;  %v454_v8 = vmul.f32 %v436_v41, %v340_v53  ;;  %v536_v9 = vmul.f32 %v524_v47, %v345_v54 }
  0xb2   : > { %v1007_v57 = vmul.f32 %v367_v33, %v332_v55  ;;  %v1009_v58 = vmul.f32 %v377_v32, %v337_v56  ;;  %v451_v11 = vmul.f32 %v424_v39, %v332_v55  ;;  %v456_v20 = vmul.f32 %v444_v42, %v345_v54 }
  0xb3   : > { %v500_v63 = vpop.permute.xlu1 %499  ;;  %v528_v15 = vpop.permute.xlu0 %527  ;;  %v534_v24 = vmul.f32 %v998_v40, %v340_v53  ;;  %v531_v29 = vmul.f32 %v996_v37, %v332_v55  ;;  %v410_v40 = vadd.f32 %v1021_v5, %v1000_v48 }
  0xb4   : > { %v530_v0 = vmul.f32 %v500_v63, %v330_v43 }
  0xb6   : > { %626 = vrot.lane.b32.xlu0 %v610_v62, %s873_s17  ;;  %546 = vrot.lane.b32.xlu1 %v530_v0, %s872_s16  ;;  %v414_v62 = vadd.f32 %v1021_v5, %v1011_v60 }
  0xb7   : > { %v592_v12 = vpop.permute.xlu2 %591 }
  0xb8   : > { %v342_v1 = vpop.f32.mrf.mxu2  ;;  %v347_v2 = vpop.f32.mrf.mxu3  ;;  %v613_v13 = vmul.f32 %v592_v12, %v337_v56  ;;  %v416_v12 = vadd.f32 %v1021_v5, %v1013_v61 }
  0xb9   : > { %v1015_v3 = vmul.f32 %v387_v27, %v342_v1  ;;  %v406_v4 = vmul.f32 %v397_v35, %v347_v2  ;;  %v457_v17 = vmul.f32 %v448_v50, %v347_v2  ;;  %v453_v27 = vmul.f32 %v992_v31, %v337_v56 }
  0xba   : > { %v455_v30 = vmul.f32 %v994_v34, %v342_v1  ;;  %v537_v33 = vmul.f32 %v528_v15, %v347_v2  ;;  %v412_v34 = vadd.f32 %v1021_v5, %v1002_v49 }
  0xbb   : > { %v1025_v6 = vadd.f32 %v1021_v5, %v406_v4  ;;  %v512_v7 = vpop.permute.xlu1 %511 }
  0xbc   : > { %v584_v21 = vpop.permute.xlu0 %583  ;;  %v533_v23 = vmul.f32 %v512_v7, %v337_v56 }
  0xbd   : > { %v611_v28 = vmul.f32 %v584_v21, %v332_v55 }
  0xbe   : > { %474 = vrot.lane.b32.xlu0 %v454_v8, %s871_s14  ;;  %558 = vrot.lane.b32.xlu1 %v536_v9, %s872_s16  ;;  %v413_v9 = vadd.f32 %v1021_v5, %v1009_v58 }
  0xbf   : > { %v600_v31 = vpop.permute.xlu2 %599 }
  0xc0   : > { %v615_v36 = vmul.f32 %v600_v31, %v342_v1 }
  0xc3   : > { %v520_v10 = vpop.permute.xlu1 %519 }
  0xc4   : > { %v535_v22 = vmul.f32 %v520_v10, %v342_v1  ;;  %v604_v25 = vpop.permute.xlu0 %603 }
  0xc5   : > { %v616_v26 = vmul.f32 %v604_v25, %v345_v54 }
  0xc6   : > { %468 = vrot.lane.b32.xlu0 %v451_v11, %s871_s14 }
  0xcc   : > { %v588_v14 = vpop.permute.xlu1 %587 }
  0xcd   : > { %v612_v16 = vmul.f32 %v588_v14, %v335_v44 }
  0xce   : > { %632 = vrot.lane.b32.xlu0 %v613_v13, %s873_s17 }
  0xcf   : > { %630 = vrot.lane.b32.xlu2 %v612_v16, %s873_s17  ;;  %v411_v16 = vadd.f32 %v1021_v5, %v1007_v57  ;;  %v415_v57 = vadd.f32 %v1021_v5, %v1015_v3 }
  0xd4   : > { %v596_v18 = vpop.permute.xlu1 %595 }
  0xd5   : > { %v614_v19 = vmul.f32 %v596_v18, %v340_v53 }
  0xd6   : > { %480 = vrot.lane.b32.xlu0 %v457_v17, %s871_s14 }
  0xd7   : > { %634 = vrot.lane.b32.xlu1 %v614_v19, %s873_s17  ;;  %478 = vrot.lane.b32.xlu2 %v456_v20, %s871_s14 }
  0xdc   : > { %v608_v32 = vpop.permute.xlu1 %607 }
  0xdd   : > { %v617_v35 = vmul.f32 %v608_v32, %v347_v2 }
  0xde   : > { %556 = vrot.lane.b32.xlu0 %v535_v22, %s872_s16 }
  0xdf   : > { %552 = vrot.lane.b32.xlu1 %v533_v23, %s872_s16  ;;  %554 = vrot.lane.b32.xlu2 %v534_v24, %s872_s16 }
  0xe6   : > { %638 = vrot.lane.b32.xlu0 %v616_v26, %s873_s17 }
  0xe7   : > { %472 = vrot.lane.b32.xlu2 %v453_v27, %s871_s14  ;;  %628 = vrot.lane.b32.xlu1 %v611_v28, %s873_s17 }
  0xef   : > { %476 = vrot.lane.b32.xlu1 %v455_v30, %s871_s14  ;;  %548 = vrot.lane.b32.xlu2 %v531_v29, %s872_s16 }
  0xf7   : > { %640 = vrot.lane.b32.xlu1 %v617_v35, %s873_s17  ;;  %560 = vrot.lane.b32.xlu2 %v537_v33, %s872_s16 }
  0xff   : > { %636 = vrot.lane.b32.xlu2 %v615_v36, %s873_s17 }
 0x106   : > { %v467_v37 = vpop.permute.xlu2 %466 }
 0x107   : > { %v490_v42 = vadd.f32 %v467_v37, %v410_v40 }
 0x11e   : > { %v471_v39 = vpop.permute.xlu1 %470 }
 0x11f   : > { %v492_v41 = vadd.f32 %v471_v39, %v412_v34 }
 0x120   : > { %v551_v38 = vpop.permute.xlu0 %550 }
 0x121   : > { %v572_v43 = vadd.f32 %v551_v38, %v492_v41 }
 0x128   : > { %v627_v44 = vpop.permute.xlu0 %626  ;;  %v547_v45 = vpop.permute.xlu1 %546 }
 0x129   : > { %v631_v46 = vpop.permute.xlu2 %630  ;;  %v570_v47 = vadd.f32 %v547_v45, %v490_v42 }
 0x12a   : > { %v652_v50 = vadd.f32 %v631_v46, %v572_v43 }
 0x12b   : > { %v650_v49 = vadd.f32 %v627_v44, %v570_v47 }
 0x12c   : > { %v660_v51 = vmax.f32 %v652_v50, 0.0 }
 0x12d   : > { %v658_v48 = vmax.f32 %v650_v49, 0.0 }
 0x12e   : > { %669 = vst.msk [vmem:[%s1059_s24 + $0x10] sm:$0xff] %vm666_vm2, %v660_v51 }
 0x12f   : > { %667 = vst.msk [vmem:[%s1059_s24] sm:$0xff] %vm666_vm2, %v658_v48 }
 0x130   : > { %v475_v52 = vpop.permute.xlu0 %474  ;;  %v559_v59 = vpop.permute.xlu1 %558 }
 0x131   : > { %v479_v53 = vpop.permute.xlu2 %478  ;;  %v494_v63 = vadd.f32 %v475_v52, %v414_v62 }
 0x132   : > { %v496_v15 = vadd.f32 %v479_v53, %v416_v12 }
 0x134   : > { %v576_v58 = vadd.f32 %v559_v59, %v496_v15 }
 0x138   : > { %v469_v54 = vpop.permute.xlu0 %468 }
 0x139   : > { %v555_v55 = vpop.permute.xlu2 %554  ;;  %v491_v18 = vadd.f32 %v469_v54, %v411_v16 }
 0x13a   : > { %v574_v1 = vadd.f32 %v555_v55, %v494_v63 }
 0x140   : > { %v633_v56 = vpop.permute.xlu0 %632 }
 0x141   : > { %v473_v0 = vpop.permute.xlu2 %472 }
 0x142   : > { %v493_v10 = vadd.f32 %v473_v0, %v413_v9 }
 0x148   : > { %v481_v2 = vpop.permute.xlu0 %480 }
 0x149   : > { %v635_v4 = vpop.permute.xlu1 %634  ;;  %v549_v13 = vpop.permute.xlu2 %548  ;;  %v497_v32 = vadd.f32 %v481_v2, %v1025_v6 }
 0x14a   : > { %v654_v7 = vadd.f32 %v635_v4, %v574_v1  ;;  %v571_v20 = vadd.f32 %v549_v13, %v491_v18 }
 0x14c   : > { %v662_v8 = vmax.f32 %v654_v7, 0.0 }
 0x14e   : > { %671 = vst.msk [vmem:[%s1059_s24 + $0x20] sm:$0xff] %vm666_vm2, %v662_v8 }
 0x150   : > { %v557_v11 = vpop.permute.xlu0 %556 }
 0x151   : > { %v553_v60 = vpop.permute.xlu1 %552  ;;  %v561_v24 = vpop.permute.xlu2 %560 }
 0x152   : > { %v573_v14 = vadd.f32 %v553_v60, %v493_v10  ;;  %v577_v35 = vadd.f32 %v561_v24, %v497_v32 }
 0x154   : > { %v653_v17 = vadd.f32 %v633_v56, %v573_v14 }
 0x156   : > { %v661_v19 = vmax.f32 %v653_v17, 0.0 }
 0x158   : > { %670 = vst.msk [vmem:[%s1059_s24 + $0x18] sm:$0xff] %vm666_vm2, %v661_v19  ;;  %v639_v21 = vpop.permute.xlu0 %638 }
 0x159   : > { %v656_v22 = vadd.f32 %v639_v21, %v576_v58  ;;  %v629_v23 = vpop.permute.xlu1 %628  ;;  %v637_v30 = vpop.permute.xlu2 %636 }
 0x15a   : > { %v651_v61 = vadd.f32 %v629_v23, %v571_v20 }
 0x15b   : > { %v664_v25 = vmax.f32 %v656_v22, 0.0 }
 0x15c   : > { %v659_v26 = vmax.f32 %v651_v61, 0.0 }
 0x15d   : > { %673 = vst.msk [vmem:[%s1059_s24 + $0x30] sm:$0xff] %vm666_vm2, %v664_v25 }
 0x15e   : > { %668 = vst.msk [vmem:[%s1059_s24 + $0x8] sm:$0xff] %vm666_vm2, %v659_v26 }
 0x161   : > { %v477_v27 = vpop.permute.xlu1 %476 }
 0x162   : > { %v495_v28 = vadd.f32 %v477_v27, %v415_v57 }
 0x164   : > { %v575_v29 = vadd.f32 %v557_v11, %v495_v28 }
 0x166   : > { %v655_v33 = vadd.f32 %v637_v30, %v575_v29 }
 0x168   : > { %v663_v31 = vmax.f32 %v655_v33, 0.0 }
 0x169   : > { %v641_v36 = vpop.permute.xlu1 %640 }
 0x16a   : > { %672 = vst.msk [vmem:[%s1059_s24 + $0x28] sm:$0xff] %vm666_vm2, %v663_v31  ;;  %v657_v38 = vadd.f32 %v641_v36, %v577_v35 }
 0x16c   : > { %v665_v37 = vmax.f32 %v657_v38, 0.0 }
 0x16e   : > { %674 = vst.msk [vmem:[%s1059_s24 + $0x38] sm:$0xff] %vm666_vm2, %v665_v37 }
 0x16f PF: > { %s14_s15 = sadd.s32 1, %s865_s15  }
 0x170   : > { %p11_p4 = scmp.ge.s32.totalorder %s14_s15, 4  }
 0x172   :  { %13 = sbr.rel (!%p11_p4) target bundleno = 1 (0x1), region = 69 }

// kernel: _lambda_.8
= control target key start
LH: loop header
LB: loop body
LE: loop exit
PB: predicated region body
PF: predicated region fallthrough
CT: control target
= control target key end

     0   :  { %s886_s15 = smov 0   ;;  %s1004_s0 = inlined_call_operand.vmem [shape: bf16[32,400], index: 0, kind: input, shape index: {}]   ;;  %s1005_s1 = inlined_call_operand.vmem [shape: f32[32,4], index: 1, kind: input, shape index: {}]   ;;  %s1006_s2 = inlined_call_operand.vmem [shape: bf16[400,128], index: 2, kind: input, shape index: {}]   ;;  %s1007_s3 = inlined_call_operand.vmem [shape: f32[1,32], index: 3, kind: input, shape index: {}]   ;;  %s1008_s4 = inlined_call_operand.vmem [shape: f32[32,32], index: 4, kind: output, shape index: {}]  }
   0x1 LB: > { %s663_s16 = sadd.s32 4294967295, %s852_s15   ;;  %p667_p0 = scmp.ge.s32.totalorder %s852_s15, 1  ;;  %s852_s15 = sphi %s886_s15, %s14_s15  }
   0x2   : > { %p175_p1 = scmp.lt.s32.totalorder %s852_s15, 3 }
   0x4   : > { %p176_p2 = pnand %p667_p0, %p175_p1 }
   0x5   : > { %s668_s23 = sshll.u32 (!%p176_p2), %s663_s16, 1  ;;  %s860_s6 = smov (!%p176_p2), 32  }
   0x6   : > { %179 = sbr.rel (%p176_p2) target bundleno = 319 (0x13f), region = 36  ;;  %p208_p3 = scmp.lt.s32.totalorder (!%p176_p2), %s668_s23, 3 }
   0xb   : > { %v806_v0 = vld [vmem:[%s1006_s2 + $0x38] sm:$0xff]  ;;  %v805_v3 = vld [vmem:[%s1006_s2 + $0x30] sm:$0xff]  ;;  %s1010_s23 = smov (!%p208_p3, %s668_s23), 3  ;;  %v854_v6 = vmov 1   ;;  %v855_v7 = vmov 2   ;;  %v856_v8 = vmov 3  }
   0xc   : > { %v814_v1 = vld [vmem:[%s1006_s2 + $0x78] sm:$0xff]  ;;  %454 = vmatpush.bf16.msra.mxu0 %v806_v0  ;;  %v813_v4 = vld [vmem:[%s1006_s2 + $0x70] sm:$0xff]  ;;  %839 = vset.pattern.permute.xlu0 %v854_v6  ;;  %s794_s30 = sshll.u32 %s1010_s23, 4  ;;  %s672_s5 = sshll.u32 %s1010_s23, 3  ;;  %v804_v9 = vld [vmem:[%s1006_s2 + $0x28] sm:$0xff]  ;;  %vm450_vm0 = vcmask 130048  }
   0xd   : > { %v822_v2 = vld [vmem:[%s1006_s2 + $0xb8] sm:$0xff]  ;;  %468 = vmatpush.bf16.msra.mxu1 %v814_v1  ;;  %v821_v5 = vld [vmem:[%s1006_s2 + $0xb0] sm:$0xff]  ;;  %840 = vset.pattern.permute.xlu1 %v855_v7  ;;  %v812_v10 = vld [vmem:[%s1006_s2 + $0x68] sm:$0xff]  ;;  %s929_s14 = scalar_lea.vmem %s1004_s0, %s794_s30  ;;  %s218_s20 = scalar_lea.vmem %s1005_s1, %s672_s5  ;;  %v857_v39 = vmov 0   ;;  %vm592_vm1 = vcmask 261120  }
   0xe   : > { %482 = vmatpush.bf16.msra.mxu2 %v822_v2  ;;  %841 = vset.pattern.permute.xlu2 %v856_v8  ;;  %v823_v11 = vld [vmem:[%s1006_s2 + $0xc0] sm:$0xff]  ;;  %v820_v12 = vld [vmem:[%s1006_s2 + $0xa8] sm:$0xff]  ;;  %v687_v14 = vld [vmem:[%s929_s14 + $0x18] sm:$0xf0]  ;;  %s859_s30 = smov 64   ;;  %s224_s11 = scalar_lea.vmem %s1008_s4, %s672_s5 }
   0xf   : > { %v796_v13 = vld [vmem:[%s929_s14 + $0xc] sm:$0xf]  ;;  %503 = vmatpush.bf16.msra.mxu3 %v823_v11  ;;  %v803_v16 = vld [vmem:[%s1006_s2 + $0x20] sm:$0xff]  ;;  %v802_v20 = vld [vmem:[%s1006_s2 + $0x18] sm:$0xff] }
  0x10   : > { %455 = vmatpush.bf16.msra.mxu0 %v805_v3  ;;  %v690_v15 = vor.u32 %v796_v13, %v687_v14  ;;  %v811_v17 = vld [vmem:[%s1006_s2 + $0x60] sm:$0xff]  ;;  %v810_v21 = vld [vmem:[%s1006_s2 + $0x58] sm:$0xff]  ;;  %v511_v23 = vld [vmem:[%s218_s20 + $0x8] sm:$0xff] }
  0x11   : > { %469 = vmatpush.bf16.msra.mxu1 %v813_v4  ;;  %v819_v18 = vld [vmem:[%s1006_s2 + $0xa0] sm:$0xff]  ;;  %v818_v22 = vld [vmem:[%s1006_s2 + $0x98] sm:$0xff]  ;;  %v801_v24 = vld [vmem:[%s1006_s2 + $0x10] sm:$0xff] }
  0x12   : > { %483 = vmatpush.bf16.msra.mxu2 %v821_v5  ;;  %791 = vmatmul.msk.bf16.vlgmr.msra.gmra.mxu3 %vm450_vm0, %v690_v15  ;;  %v510_v19 = vld [vmem:[%s218_s20] sm:$0xff]  ;;  %v809_v25 = vld [vmem:[%s1006_s2 + $0x50] sm:$0xff]  ;;  %v800_v27 = vld [vmem:[%s1006_s2 + $0x8] sm:$0xff] }
  0x13   : > { %531 = vperm.xlu0 %839, %v510_v19   ;;  %551 = vperm.xlu1 %840, %v510_v19   ;;  %v817_v26 = vld [vmem:[%s1006_s2 + $0x90] sm:$0xff]  ;;  %v808_v28 = vld [vmem:[%s1006_s2 + $0x48] sm:$0xff]  ;;  %v799_v30 = vld [vmem:[%s1006_s2] sm:$0xff] }
  0x14   : > { %456 = vmatpush.bf16.msra.mxu0 %v804_v9  ;;  %571 = vperm.xlu2 %841, %v510_v19   ;;  %v816_v29 = vld [vmem:[%s1006_s2 + $0x88] sm:$0xff]  ;;  %v807_v31 = vld [vmem:[%s1006_s2 + $0x40] sm:$0xff]  ;;  %v797_v33 = vld [vmem:[%s929_s14 + $0xc] sm:$0xf0] }
  0x15   : > { %470 = vmatpush.bf16.msra.mxu1 %v812_v10  ;;  %v677_v32 = vld [vmem:[%s929_s14] sm:$0xf]  ;;  %v795_v34 = vld [vmem:[%s929_s14 + $0x4] sm:$0xf]  ;;  %v679_v35 = vld [vmem:[%s929_s14 + $0x10] sm:$0xf0] }
  0x16   : > { %484 = vmatpush.bf16.msra.mxu2 %v820_v12  ;;  %v815_v36 = vld [vmem:[%s1006_s2 + $0x80] sm:$0xff]  ;;  %v685_v37 = vld [vmem:[%s929_s14 + $0x8] sm:$0xf]  ;;  %v798_v38 = vld [vmem:[%s929_s14 + $0x14] sm:$0xf0]  ;;  %v678_v40 = vor.u32 %v797_v33, %v677_v32  ;;  %v682_v41 = vor.u32 %v795_v34, %v679_v35  ;;  %s858_s14 = smov 96  }
  0x17   : > { %v686_v42 = vor.u32 %v798_v38, %v685_v37  ;;  %v845_v9 = vld [vmem:[%s1007_s3] ss:$0 sm:$0xff] }
  0x18   : > { %457 = vmatpush.bf16.msra.mxu0 %v803_v16 }
  0x19   : > { %471 = vmatpush.bf16.msra.mxu1 %v811_v17 }
  0x1a   : > { %485 = vmatpush.bf16.msra.mxu2 %v819_v18 }
  0x1b   : > { %535 = vperm.xlu0 %839, %v511_v23   ;;  %555 = vperm.xlu1 %840, %v511_v23  }
  0x1c   : > { %458 = vmatpush.bf16.msra.mxu0 %v802_v20  ;;  %575 = vperm.xlu2 %841, %v511_v23  }
  0x1d   : > { %472 = vmatpush.bf16.msra.mxu1 %v810_v21 }
  0x1e   : > { %486 = vmatpush.bf16.msra.mxu2 %v818_v22 }
  0x20   : > { %459 = vmatpush.bf16.msra.mxu0 %v801_v24 }
  0x21   : > { %473 = vmatpush.bf16.msra.mxu1 %v809_v25 }
  0x22   : > { %487 = vmatpush.bf16.msra.mxu2 %v817_v26 }
  0x23   : > { %842 = vset.pattern.permute.xlu0 %v857_v39  ;;  %843 = vset.pattern.permute.xlu1 %v857_v39 }
  0x24   : > { %460 = vmatpush.bf16.msra.mxu0 %v800_v27  ;;  %515 = vperm.xlu0 %842, %v510_v19  }
  0x25   : > { %474 = vmatpush.bf16.msra.mxu1 %v808_v28  ;;  %520 = vperm.xlu1 %843, %v511_v23  }
  0x26   : > { %488 = vmatpush.bf16.msra.mxu2 %v816_v29 }
  0x28   : > { %461 = vmatpush.bf16.msra.mxu0 %v799_v30 }
  0x29   : > { %475 = vmatpush.bf16.msra.mxu1 %v807_v31 }
  0x2a   : > { %489 = vmatpush.bf16.msra.mxu2 %v815_v36 }
  0x2b   : > { %462 = vmatmul.bf16.vlgmr.msra.gmra.mxu0 %v678_v40 }
  0x2c   : > { %476 = vmatmul.bf16.vlgmr.msra.gmra.mxu1 %v682_v41  ;;  %844 = vset.pattern.permute.xlu0 %v856_v8 }
  0x2d   : > { %490 = vmatmul.bf16.vlgmr.msra.gmra.mxu2 %v686_v42 }
  0x6e   : > { %v572_v57 = vpop.permute.xlu2 %571 }
  0x76   : > { %v576_v2 = vpop.permute.xlu2 %575 }
  0x85   : > { %v532_v49 = vpop.permute.xlu0 %531  ;;  %v552_v50 = vpop.permute.xlu1 %551 }
  0x8d   : > { %v536_v61 = vpop.permute.xlu0 %535  ;;  %v556_v62 = vpop.permute.xlu1 %555 }
  0x95   : > { %v505_v46 = vpop.f32.mrf.mxu3 }
  0x96   : > { %v516_v7 = vpop.permute.xlu0 %515 }
  0x97   : > { %v521_v6 = vpop.permute.xlu1 %520 }
  0x9d   : > { %v507_v59 = vpop.f32.mrf.mxu3 }
  0xa8   : > { %v463_v43 = vpop.f32.mrf.mxu0 }
  0xa9   : > { %v477_v44 = vpop.f32.mrf.mxu1 }
  0xaa   : > { %v478_v45 = vadd.f32 %v477_v44, %v463_v43 }
  0xb0   : > { %v491_v47 = vpop.f32.mrf.mxu2  ;;  %v465_v52 = vpop.f32.mrf.mxu0 }
  0xb1   : > { %v492_v48 = vadd.f32 %v491_v47, %v478_v45  ;;  %v479_v53 = vpop.f32.mrf.mxu1 }
  0xb2   : > { %v480_v55 = vadd.f32 %v479_v53, %v465_v52 }
  0xb3   : > { %v506_v51 = vadd.f32 %v505_v46, %v492_v48 }
  0xb5   : > { %v538_v54 = vmul.f32 %v532_v49, %v506_v51  ;;  %v558_v1 = vmul.f32 %v552_v50, %v506_v51  ;;  %v578_v3 = vmul.f32 %v572_v57, %v506_v51  ;;  %v523_v11 = vmul.f32 %v516_v7, %v506_v51 }
  0xb7   : > { %542 = vrot.lane.b32.xlu2 %v538_v54, %s858_s14  ;;  %v528_v15 = vadd.f32 %v845_v9, %v523_v11 }
  0xb8   : > { %v493_v56 = vpop.f32.mrf.mxu2 }
  0xb9   : > { %v494_v58 = vadd.f32 %v493_v56, %v480_v55 }
  0xbb   : > { %v508_v60 = vadd.f32 %v507_v59, %v494_v58 }
  0xbd   : > { %v559_v63 = vmul.f32 %v556_v62, %v508_v60  ;;  %v539_v0 = vmul.f32 %v536_v61, %v508_v60  ;;  %v579_v4 = vmul.f32 %v576_v2, %v508_v60  ;;  %v524_v8 = vmul.f32 %v521_v6, %v508_v60 }
  0xbf   : > { %564 = vrot.lane.b32.xlu0 %v559_v63, %s859_s30  ;;  %544 = vrot.lane.b32.xlu1 %v539_v0, %s858_s14  ;;  %v529_v12 = vadd.f32 %v845_v9, %v524_v8 }
  0xc0   : > { %562 = vrot.lane.b32.xlu2 %v558_v1, %s859_s30 }
  0xc7   : > { %582 = vrot.lane.b32.xlu1 %v578_v3, %s860_s6 }
  0xc8   : > { %584 = vrot.lane.b32.xlu2 %v579_v4, %s860_s6 }
 0x111   : > { %v543_v5 = vpop.permute.xlu2 %542 }
 0x112   : > { %v548_v18 = vadd.f32 %v543_v5, %v528_v15 }
 0x11a   : > { %v563_v10 = vpop.permute.xlu2 %562 }
 0x11b   : > { %v568_v19 = vadd.f32 %v563_v10, %v548_v18 }
 0x122   : > { %v585_v20 = vpop.permute.xlu2 %584 }
 0x131   : > { %v545_v13 = vpop.permute.xlu1 %544  ;;  %v565_v16 = vpop.permute.xlu0 %564 }
 0x132   : > { %v549_v14 = vadd.f32 %v545_v13, %v529_v12 }
 0x134   : > { %v569_v17 = vadd.f32 %v565_v16, %v549_v14 }
 0x136   : > { %v589_v21 = vadd.f32 %v585_v20, %v569_v17 }
 0x138   : > { %v591_v25 = vmax.f32 %v589_v21, 0.0 }
 0x139   : > { %v583_v22 = vpop.permute.xlu1 %582 }
 0x13a   : > { %v588_v23 = vadd.f32 %v583_v22, %v568_v19  ;;  %594 = vst.msk [vmem:[%s224_s11 + $0x8] sm:$0xff] %vm592_vm1, %v591_v25 }
 0x13c   : > { %v590_v24 = vmax.f32 %v588_v23, 0.0 }
 0x13e   : > { %593 = vst.msk [vmem:[%s224_s11] sm:$0xff] %vm592_vm1, %v590_v24 }
 0x13f PF: > { %s14_s15 = sadd.s32 1, %s852_s15  }
 0x140   : > { %p11_p4 = scmp.ge.s32.totalorder %s14_s15, 4  }
 0x142   :  { %13 = sbr.rel (!%p11_p4) target bundleno = 1 (0x1), region = 69 }

// kernel: _lambda_.9
= control target key start
LH: loop header
LB: loop body
LE: loop exit
PB: predicated region body
PF: predicated region fallthrough
CT: control target
= control target key end

     0   :  { %s768_s15 = smov 0   ;;  %s864_s0 = inlined_call_operand.vmem [shape: bf16[32,288], index: 0, kind: input, shape index: {}]   ;;  %s865_s1 = inlined_call_operand.vmem [shape: f32[32,4], index: 1, kind: input, shape index: {}]   ;;  %s866_s2 = inlined_call_operand.vmem [shape: bf16[288,128], index: 2, kind: input, shape index: {}]   ;;  %s867_s3 = inlined_call_operand.vmem [shape: f32[1,32], index: 3, kind: input, shape index: {}]   ;;  %s868_s4 = inlined_call_operand.vmem [shape: f32[32,32], index: 4, kind: output, shape index: {}]  }
   0x1 LB: > { %s586_s16 = sadd.s32 4294967295, %s734_s15   ;;  %p590_p0 = scmp.ge.s32.totalorder %s734_s15, 1  ;;  %s734_s15 = sphi %s768_s15, %s14_s15  }
   0x2   : > { %p175_p1 = scmp.lt.s32.totalorder %s734_s15, 3 }
   0x4   : > { %p176_p2 = pnand %p590_p0, %p175_p1 }
   0x5   : > { %s591_s21 = sshll.u32 (!%p176_p2), %s586_s16, 1  ;;  %s740_s13 = smov (!%p176_p2), 96  }
   0x6   : > { %179 = sbr.rel (%p176_p2) target bundleno = 310 (0x136), region = 36  ;;  %p208_p3 = scmp.lt.s32.totalorder (!%p176_p2), %s591_s21, 3 }
   0x7   : > { %s741_s14 = smov (!%p176_p2), 64  }
   0xb   : > { %v694_v0 = vld [vmem:[%s866_s2 + $0x38] sm:$0xff]  ;;  %v736_v2 = vmov 1   ;;  %v693_v3 = vld [vmem:[%s866_s2 + $0x30] sm:$0xff]  ;;  %v704_v5 = vld [vmem:[%s866_s2 + $0x88] sm:$0xff]  ;;  %s870_s21 = smov (!%p208_p3, %s591_s21), 3  ;;  %v737_v6 = vmov 2  }
   0xc   : > { %v702_v1 = vld [vmem:[%s866_s2 + $0x78] sm:$0xff]  ;;  %721 = vset.pattern.permute.xlu0 %v736_v2  ;;  %394 = vmatpush.bf16.msra.mxu0 %v694_v0  ;;  %v701_v4 = vld [vmem:[%s866_s2 + $0x70] sm:$0xff]  ;;  %v738_v7 = vmov 3   ;;  %v703_v8 = vld [vmem:[%s866_s2 + $0x80] sm:$0xff]  ;;  %s705_s30 = smul.u32 12, %s870_s21  ;;  %s594_s5 = sshll.u32 %s870_s21, 3 }
   0xd   : > { %408 = vmatpush.bf16.msra.mxu1 %v702_v1  ;;  %722 = vset.pattern.permute.xlu1 %v737_v6  ;;  %v692_v9 = vld [vmem:[%s866_s2 + $0x28] sm:$0xff]  ;;  %s218_s12 = scalar_lea.vmem %s865_s1, %s594_s5  ;;  %vm390_vm0 = vcmask 261120   ;;  %v691_v15 = vld [vmem:[%s866_s2 + $0x20] sm:$0xff]  ;;  %v690_v18 = vld [vmem:[%s866_s2 + $0x18] sm:$0xff]  ;;  %v739_v24 = vmov 0   ;;  %s224_s22 = scalar_lea.vmem %s868_s4, %s594_s5 }
   0xe   : > { %723 = vset.pattern.permute.xlu2 %v738_v7  ;;  %428 = vmatpush.bf16.msra.mxu2 %v704_v5  ;;  %v700_v10 = vld [vmem:[%s866_s2 + $0x68] sm:$0xff]  ;;  %s812_s16 = scalar_lea.vmem %s864_s0, %s705_s30  ;;  %v436_v11 = vld [vmem:[%s218_s12] sm:$0xff]  ;;  %v698_v19 = vld [vmem:[%s866_s2 + $0x58] sm:$0xff] }
   0xf   : > { %v607_v12 = vld [vmem:[%s812_s16 + $0x8] sm:$0xf]  ;;  %v686_v13 = vld [vmem:[%s812_s16 + $0x10] sm:$0xf0]  ;;  %457 = vperm.xlu0 %721, %v436_v11   ;;  %477 = vperm.xlu1 %722, %v436_v11   ;;  %v699_v16 = vld [vmem:[%s866_s2 + $0x60] sm:$0xff] }
  0x10   : > { %395 = vmatpush.bf16.msra.mxu0 %v693_v3  ;;  %v608_v14 = vor.u32 %v686_v13, %v607_v12  ;;  %497 = vperm.xlu2 %723, %v436_v11   ;;  %v437_v17 = vld [vmem:[%s218_s12 + $0x8] sm:$0xff]  ;;  %v689_v20 = vld [vmem:[%s866_s2 + $0x10] sm:$0xff]  ;;  %v687_v25 = vld [vmem:[%s866_s2] sm:$0xff] }
  0x11   : > { %409 = vmatpush.bf16.msra.mxu1 %v701_v4  ;;  %v697_v21 = vld [vmem:[%s866_s2 + $0x50] sm:$0xff]  ;;  %v688_v22 = vld [vmem:[%s866_s2 + $0x8] sm:$0xff]  ;;  %v695_v26 = vld [vmem:[%s866_s2 + $0x40] sm:$0xff] }
  0x12   : > { %429 = vmatpush.bf16.msra.mxu2 %v703_v8  ;;  %v696_v23 = vld [vmem:[%s866_s2 + $0x48] sm:$0xff]  ;;  %v599_v27 = vld [vmem:[%s812_s16] sm:$0xf]  ;;  %v684_v29 = vld [vmem:[%s812_s16 + $0x4] sm:$0xf] }
  0x13   : > { %v685_v28 = vld [vmem:[%s812_s16 + $0x8] sm:$0xf0]  ;;  %v601_v30 = vld [vmem:[%s812_s16 + $0xc] sm:$0xf0]  ;;  %s742_s16 = smov 32  }
  0x14   : > { %396 = vmatpush.bf16.msra.mxu0 %v692_v9  ;;  %v600_v31 = vor.u32 %v685_v28, %v599_v27  ;;  %v604_v32 = vor.u32 %v684_v29, %v601_v30  ;;  %v727_v59 = vld [vmem:[%s867_s3] ss:$0 sm:$0xff] }
  0x15   : > { %410 = vmatpush.bf16.msra.mxu1 %v700_v10  ;;  %681 = vmatmul.msk.bf16.vlgmr.msra.gmra.mxu2 %vm390_vm0, %v608_v14 }
  0x17   : > { %461 = vperm.xlu0 %721, %v437_v17   ;;  %481 = vperm.xlu1 %722, %v437_v17  }
  0x18   : > { %397 = vmatpush.bf16.msra.mxu0 %v691_v15  ;;  %501 = vperm.xlu2 %723, %v437_v17  }
  0x19   : > { %411 = vmatpush.bf16.msra.mxu1 %v699_v16 }
  0x1c   : > { %398 = vmatpush.bf16.msra.mxu0 %v690_v18 }
  0x1d   : > { %412 = vmatpush.bf16.msra.mxu1 %v698_v19 }
  0x1f   : > { %724 = vset.pattern.permute.xlu0 %v739_v24  ;;  %725 = vset.pattern.permute.xlu1 %v739_v24 }
  0x20   : > { %399 = vmatpush.bf16.msra.mxu0 %v689_v20  ;;  %441 = vperm.xlu0 %724, %v436_v11  }
  0x21   : > { %413 = vmatpush.bf16.msra.mxu1 %v697_v21  ;;  %446 = vperm.xlu1 %725, %v437_v17  }
  0x24   : > { %400 = vmatpush.bf16.msra.mxu0 %v688_v22 }
  0x25   : > { %414 = vmatpush.bf16.msra.mxu1 %v696_v23 }
  0x28   : > { %401 = vmatpush.bf16.msra.mxu0 %v687_v25  ;;  %726 = vset.pattern.permute.xlu0 %v738_v7 }
  0x29   : > { %415 = vmatpush.bf16.msra.mxu1 %v695_v26 }
  0x2b   : > { %402 = vmatmul.bf16.vlgmr.msra.gmra.mxu0 %v600_v31 }
  0x2c   : > { %416 = vmatmul.bf16.vlgmr.msra.gmra.mxu1 %v604_v32 }
  0x6a   : > { %v498_v43 = vpop.permute.xlu2 %497 }
  0x72   : > { %v502_v52 = vpop.permute.xlu2 %501 }
  0x81   : > { %v458_v37 = vpop.permute.xlu0 %457  ;;  %v478_v38 = vpop.permute.xlu1 %477 }
  0x89   : > { %v462_v47 = vpop.permute.xlu0 %461  ;;  %v482_v48 = vpop.permute.xlu1 %481 }
  0x92   : > { %v442_v57 = vpop.permute.xlu0 %441 }
  0x93   : > { %v447_v56 = vpop.permute.xlu1 %446 }
  0x98   : > { %v431_v33 = vpop.f32.mrf.mxu2 }
  0xa0   : > { %v433_v45 = vpop.f32.mrf.mxu2 }
  0xa8   : > { %v403_v34 = vpop.f32.mrf.mxu0 }
  0xa9   : > { %v417_v35 = vpop.f32.mrf.mxu1 }
  0xaa   : > { %v418_v36 = vadd.f32 %v417_v35, %v403_v34 }
  0xac   : > { %v432_v39 = vadd.f32 %v431_v33, %v418_v36 }
  0xae   : > { %v464_v40 = vmul.f32 %v458_v37, %v432_v39  ;;  %v484_v51 = vmul.f32 %v478_v38, %v432_v39  ;;  %v504_v53 = vmul.f32 %v498_v43, %v432_v39  ;;  %v449_v60 = vmul.f32 %v442_v57, %v432_v39 }
  0xb0   : > { %468 = vrot.lane.b32.xlu2 %v464_v40, %s740_s13  ;;  %v405_v41 = vpop.f32.mrf.mxu0  ;;  %v454_v1 = vadd.f32 %v727_v59, %v449_v60 }
  0xb1   : > { %v419_v42 = vpop.f32.mrf.mxu1 }
  0xb2   : > { %v420_v44 = vadd.f32 %v419_v42, %v405_v41 }
  0xb4   : > { %v434_v46 = vadd.f32 %v433_v45, %v420_v44 }
  0xb6   : > { %v485_v49 = vmul.f32 %v482_v48, %v434_v46  ;;  %v465_v50 = vmul.f32 %v462_v47, %v434_v46  ;;  %v505_v54 = vmul.f32 %v502_v52, %v434_v46  ;;  %v450_v58 = vmul.f32 %v447_v56, %v434_v46 }
  0xb8   : > { %490 = vrot.lane.b32.xlu0 %v485_v49, %s741_s14  ;;  %470 = vrot.lane.b32.xlu1 %v465_v50, %s740_s13  ;;  %v455_v63 = vadd.f32 %v727_v59, %v450_v58 }
  0xb9   : > { %488 = vrot.lane.b32.xlu2 %v484_v51, %s741_s14 }
  0xc0   : > { %508 = vrot.lane.b32.xlu1 %v504_v53, %s742_s16 }
  0xc1   : > { %510 = vrot.lane.b32.xlu2 %v505_v54, %s742_s16 }
 0x10a   : > { %v469_v55 = vpop.permute.xlu2 %468 }
 0x10b   : > { %v474_v2 = vadd.f32 %v469_v55, %v454_v1 }
 0x113   : > { %v489_v61 = vpop.permute.xlu2 %488 }
 0x114   : > { %v494_v5 = vadd.f32 %v489_v61, %v474_v2 }
 0x11b   : > { %v511_v7 = vpop.permute.xlu2 %510 }
 0x12a   : > { %v471_v62 = vpop.permute.xlu1 %470  ;;  %v491_v3 = vpop.permute.xlu0 %490 }
 0x12b   : > { %v475_v0 = vadd.f32 %v471_v62, %v455_v63 }
 0x12d   : > { %v495_v4 = vadd.f32 %v491_v3, %v475_v0 }
 0x12f   : > { %v515_v9 = vadd.f32 %v511_v7, %v495_v4 }
 0x131   : > { %517 = vst.msk [vmem:[%s224_s22 + $0x8] sm:$0xff] %vm390_vm0, %v515_v9 }
 0x132   : > { %v509_v6 = vpop.permute.xlu1 %508 }
 0x133   : > { %v514_v8 = vadd.f32 %v509_v6, %v494_v5 }
 0x135   : > { %516 = vst.msk [vmem:[%s224_s22] sm:$0xff] %vm390_vm0, %v514_v8 }
 0x136 PF: > { %s14_s15 = sadd.s32 1, %s734_s15  }
 0x137   : > { %p11_p4 = scmp.ge.s32.totalorder %s14_s15, 4  }
 0x139   :  { %13 = sbr.rel (!%p11_p4) target bundleno = 1 (0x1), region = 69 }

// kernel: _lambda_.10
= control target key start
LH: loop header
LB: loop body
LE: loop exit
PB: predicated region body
PF: predicated region fallthrough
CT: control target
= control target key end

     0   :  { %s771_s15 = smov 0   ;;  %s864_s0 = inlined_call_operand.vmem [shape: bf16[32,288], index: 0, kind: input, shape index: {}]   ;;  %s865_s1 = inlined_call_operand.vmem [shape: f32[32,4], index: 1, kind: input, shape index: {}]   ;;  %s866_s2 = inlined_call_operand.vmem [shape: bf16[288,64], index: 2, kind: input, shape index: {}]   ;;  %s867_s3 = inlined_call_operand.vmem [shape: f32[1,16], index: 3, kind: input, shape index: {}]   ;;  %s868_s4 = inlined_call_operand.vmem [shape: f32[32,16], index: 4, kind: output, shape index: {}]  }
   0x1 LB: > { %s589_s16 = sadd.s32 4294967295, %s737_s15   ;;  %p593_p0 = scmp.ge.s32.totalorder %s737_s15, 1  ;;  %s737_s15 = sphi %s771_s15, %s14_s15  }
   0x2   : > { %p175_p1 = scmp.lt.s32.totalorder %s737_s15, 3 }
   0x4   : > { %p176_p2 = pnand %p593_p0, %p175_p1 }
   0x5   : > { %s594_s21 = sshll.u32 (!%p176_p2), %s589_s16, 1  ;;  %s743_s13 = smov (!%p176_p2), 112  }
   0x6   : > { %179 = sbr.rel (%p176_p2) target bundleno = 312 (0x138), region = 36  ;;  %p208_p3 = scmp.lt.s32.totalorder (!%p176_p2), %s594_s21, 3 }
   0x7   : > { %s744_s14 = smov (!%p176_p2), 96  }
   0xb   : > { %v697_v0 = vld [vmem:[%s866_s2 + $0x38] sm:$0xff]  ;;  %v739_v2 = vmov 1   ;;  %v696_v3 = vld [vmem:[%s866_s2 + $0x30] sm:$0xff]  ;;  %v707_v5 = vld [vmem:[%s866_s2 + $0x88] sm:$0xff]  ;;  %s870_s21 = smov (!%p208_p3, %s594_s21), 3  ;;  %v740_v6 = vmov 2  }
   0xc   : > { %v705_v1 = vld [vmem:[%s866_s2 + $0x78] sm:$0xff]  ;;  %724 = vset.pattern.permute.xlu0 %v739_v2  ;;  %394 = vmatpush.bf16.msra.mxu0 %v697_v0  ;;  %v704_v4 = vld [vmem:[%s866_s2 + $0x70] sm:$0xff]  ;;  %v741_v7 = vmov 3   ;;  %v706_v8 = vld [vmem:[%s866_s2 + $0x80] sm:$0xff]  ;;  %s708_s30 = smul.u32 12, %s870_s21  ;;  %s597_s5 = sshll.u32 %s870_s21, 3 }
   0xd   : > { %408 = vmatpush.bf16.msra.mxu1 %v705_v1  ;;  %725 = vset.pattern.permute.xlu1 %v740_v6  ;;  %v695_v9 = vld [vmem:[%s866_s2 + $0x28] sm:$0xff]  ;;  %s218_s12 = scalar_lea.vmem %s865_s1, %s597_s5  ;;  %vm390_vm0 = vcmask 261120   ;;  %v694_v15 = vld [vmem:[%s866_s2 + $0x20] sm:$0xff]  ;;  %v693_v18 = vld [vmem:[%s866_s2 + $0x18] sm:$0xff]  ;;  %v742_v24 = vmov 0   ;;  %s224_s22 = scalar_lea.vmem %s868_s4, %s597_s5  ;;  %vm518_vm1 = vcmask 130048  }
   0xe   : > { %726 = vset.pattern.permute.xlu2 %v741_v7  ;;  %428 = vmatpush.bf16.msra.mxu2 %v707_v5  ;;  %v703_v10 = vld [vmem:[%s866_s2 + $0x68] sm:$0xff]  ;;  %s815_s16 = scalar_lea.vmem %s864_s0, %s708_s30  ;;  %v436_v11 = vld [vmem:[%s218_s12] sm:$0xff]  ;;  %v701_v19 = vld [vmem:[%s866_s2 + $0x58] sm:$0xff] }
   0xf   : > { %v610_v12 = vld [vmem:[%s815_s16 + $0x8] sm:$0xf]  ;;  %v689_v13 = vld [vmem:[%s815_s16 + $0x10] sm:$0xf0]  ;;  %457 = vperm.xlu0 %724, %v436_v11   ;;  %477 = vperm.xlu1 %725, %v436_v11   ;;  %v702_v16 = vld [vmem:[%s866_s2 + $0x60] sm:$0xff] }
  0x10   : > { %395 = vmatpush.bf16.msra.mxu0 %v696_v3  ;;  %v611_v14 = vor.u32 %v689_v13, %v610_v12  ;;  %497 = vperm.xlu2 %726, %v436_v11   ;;  %v437_v17 = vld [vmem:[%s218_s12 + $0x8] sm:$0xff]  ;;  %v692_v20 = vld [vmem:[%s866_s2 + $0x10] sm:$0xff]  ;;  %v690_v25 = vld [vmem:[%s866_s2] sm:$0xff] }
  0x11   : > { %409 = vmatpush.bf16.msra.mxu1 %v704_v4  ;;  %v700_v21 = vld [vmem:[%s866_s2 + $0x50] sm:$0xff]  ;;  %v691_v22 = vld [vmem:[%s866_s2 + $0x8] sm:$0xff]  ;;  %v698_v26 = vld [vmem:[%s866_s2 + $0x40] sm:$0xff] }
  0x12   : > { %429 = vmatpush.bf16.msra.mxu2 %v706_v8  ;;  %v699_v23 = vld [vmem:[%s866_s2 + $0x48] sm:$0xff]  ;;  %v602_v27 = vld [vmem:[%s815_s16] sm:$0xf]  ;;  %v687_v29 = vld [vmem:[%s815_s16 + $0x4] sm:$0xf] }
  0x13   : > { %v688_v28 = vld [vmem:[%s815_s16 + $0x8] sm:$0xf0]  ;;  %v604_v30 = vld [vmem:[%s815_s16 + $0xc] sm:$0xf0]  ;;  %s745_s16 = smov 80  }
  0x14   : > { %396 = vmatpush.bf16.msra.mxu0 %v695_v9  ;;  %v603_v31 = vor.u32 %v688_v28, %v602_v27  ;;  %v607_v32 = vor.u32 %v687_v29, %v604_v30  ;;  %v730_v59 = vld [vmem:[%s867_s3] ss:$0 sm:$0xff] }
  0x15   : > { %410 = vmatpush.bf16.msra.mxu1 %v703_v10  ;;  %684 = vmatmul.msk.bf16.vlgmr.msra.gmra.mxu2 %vm390_vm0, %v611_v14 }
  0x17   : > { %461 = vperm.xlu0 %724, %v437_v17   ;;  %481 = vperm.xlu1 %725, %v437_v17  }
  0x18   : > { %397 = vmatpush.bf16.msra.mxu0 %v694_v15  ;;  %501 = vperm.xlu2 %726, %v437_v17  }
  0x19   : > { %411 = vmatpush.bf16.msra.mxu1 %v702_v16 }
  0x1c   : > { %398 = vmatpush.bf16.msra.mxu0 %v693_v18 }
  0x1d   : > { %412 = vmatpush.bf16.msra.mxu1 %v701_v19 }
  0x1f   : > { %727 = vset.pattern.permute.xlu0 %v742_v24  ;;  %728 = vset.pattern.permute.xlu1 %v742_v24 }
  0x20   : > { %399 = vmatpush.bf16.msra.mxu0 %v692_v20  ;;  %441 = vperm.xlu0 %727, %v436_v11  }
  0x21   : > { %413 = vmatpush.bf16.msra.mxu1 %v700_v21  ;;  %446 = vperm.xlu1 %728, %v437_v17  }
  0x24   : > { %400 = vmatpush.bf16.msra.mxu0 %v691_v22 }
  0x25   : > { %414 = vmatpush.bf16.msra.mxu1 %v699_v23 }
  0x28   : > { %401 = vmatpush.bf16.msra.mxu0 %v690_v25  ;;  %729 = vset.pattern.permute.xlu0 %v741_v7 }
  0x29   : > { %415 = vmatpush.bf16.msra.mxu1 %v698_v26 }
  0x2b   : > { %402 = vmatmul.bf16.vlgmr.msra.gmra.mxu0 %v603_v31 }
  0x2c   : > { %416 = vmatmul.bf16.vlgmr.msra.gmra.mxu1 %v607_v32 }
  0x6a   : > { %v498_v43 = vpop.permute.xlu2 %497 }
  0x72   : > { %v502_v52 = vpop.permute.xlu2 %501 }
  0x81   : > { %v458_v37 = vpop.permute.xlu0 %457  ;;  %v478_v38 = vpop.permute.xlu1 %477 }
  0x89   : > { %v462_v47 = vpop.permute.xlu0 %461  ;;  %v482_v48 = vpop.permute.xlu1 %481 }
  0x92   : > { %v442_v57 = vpop.permute.xlu0 %441 }
  0x93   : > { %v447_v56 = vpop.permute.xlu1 %446 }
  0x98   : > { %v431_v33 = vpop.f32.mrf.mxu2 }
  0xa0   : > { %v433_v45 = vpop.f32.mrf.mxu2 }
  0xa8   : > { %v403_v34 = vpop.f32.mrf.mxu0 }
  0xa9   : > { %v417_v35 = vpop.f32.mrf.mxu1 }
  0xaa   : > { %v418_v36 = vadd.f32 %v417_v35, %v403_v34 }
  0xac   : > { %v432_v39 = vadd.f32 %v431_v33, %v418_v36 }
  0xae   : > { %v464_v40 = vmul.f32 %v458_v37, %v432_v39  ;;  %v484_v51 = vmul.f32 %v478_v38, %v432_v39  ;;  %v504_v53 = vmul.f32 %v498_v43, %v432_v39  ;;  %v449_v61 = vmul.f32 %v442_v57, %v432_v39 }
  0xb0   : > { %468 = vrot.lane.b32.xlu2 %v464_v40, %s743_s13  ;;  %v405_v41 = vpop.f32.mrf.mxu0  ;;  %v454_v1 = vadd.f32 %v730_v59, %v449_v61 }
  0xb1   : > { %v419_v42 = vpop.f32.mrf.mxu1 }
  0xb2   : > { %v420_v44 = vadd.f32 %v419_v42, %v405_v41 }
  0xb4   : > { %v434_v46 = vadd.f32 %v433_v45, %v420_v44 }
  0xb6   : > { %v485_v49 = vmul.f32 %v482_v48, %v434_v46  ;;  %v465_v50 = vmul.f32 %v462_v47, %v434_v46  ;;  %v505_v54 = vmul.f32 %v502_v52, %v434_v46  ;;  %v450_v58 = vmul.f32 %v447_v56, %v434_v46 }
  0xb8   : > { %490 = vrot.lane.b32.xlu0 %v485_v49, %s744_s14  ;;  %470 = vrot.lane.b32.xlu1 %v465_v50, %s743_s13  ;;  %v455_v62 = vadd.f32 %v730_v59, %v450_v58 }
  0xb9   : > { %488 = vrot.lane.b32.xlu2 %v484_v51, %s744_s14 }
  0xc0   : > { %508 = vrot.lane.b32.xlu1 %v504_v53, %s745_s16 }
  0xc1   : > { %510 = vrot.lane.b32.xlu2 %v505_v54, %s745_s16 }
 0x10a   : > { %v469_v55 = vpop.permute.xlu2 %468 }
 0x10b   : > { %v474_v4 = vadd.f32 %v469_v55, %v454_v1 }
 0x113   : > { %v489_v60 = vpop.permute.xlu2 %488 }
 0x114   : > { %v494_v5 = vadd.f32 %v489_v60, %v474_v4 }
 0x11b   : > { %v511_v6 = vpop.permute.xlu2 %510 }
 0x12a   : > { %v471_v63 = vpop.permute.xlu1 %470  ;;  %v491_v2 = vpop.permute.xlu0 %490 }
 0x12b   : > { %v475_v0 = vadd.f32 %v471_v63, %v455_v62 }
 0x12d   : > { %v495_v3 = vadd.f32 %v491_v2, %v475_v0 }
 0x12f   : > { %v515_v7 = vadd.f32 %v511_v6, %v495_v3 }
 0x131   : > { %v517_v11 = vmax.f32 %v515_v7, 0.0 }
 0x132   : > { %v509_v8 = vpop.permute.xlu1 %508 }
 0x133   : > { %v514_v9 = vadd.f32 %v509_v8, %v494_v5  ;;  %520 = vst.msk [vmem:[%s224_s22 + $0x8] sm:$0xff] %vm518_vm1, %v517_v11 }
 0x135   : > { %v516_v10 = vmax.f32 %v514_v9, 0.0 }
 0x137   : > { %519 = vst.msk [vmem:[%s224_s22] sm:$0xff] %vm518_vm1, %v516_v10 }
 0x138 PF: > { %s14_s15 = sadd.s32 1, %s737_s15  }
 0x139   : > { %p11_p4 = scmp.ge.s32.totalorder %s14_s15, 4  }
 0x13b   :  { %13 = sbr.rel (!%p11_p4) target bundleno = 1 (0x1), region = 69 }

// kernel: _lambda_.11
= control target key start
LH: loop header
LB: loop body
LE: loop exit
PB: predicated region body
PF: predicated region fallthrough
CT: control target
= control target key end

     0   :  { %s494_s15 = smov 0   ;;  %s528_s0 = inlined_call_operand.vmem [shape: bf16[32,16], index: 0, kind: input, shape index: {}]   ;;  %s529_s1 = inlined_call_operand.vmem [shape: f32[32,4], index: 1, kind: input, shape index: {}]   ;;  %s530_s2 = inlined_call_operand.vmem [shape: bf16[16,128], index: 2, kind: input, shape index: {}]   ;;  %s531_s3 = inlined_call_operand.vmem [shape: f32[1,32], index: 3, kind: input, shape index: {}]   ;;  %s532_s4 = inlined_call_operand.vmem [shape: f32[32,32], index: 4, kind: output, shape index: {}]  }
   0x1 LB: > { %s408_s16 = sadd.s32 4294967295, %s460_s15   ;;  %p412_p0 = scmp.ge.s32.totalorder %s460_s15, 1  ;;  %s460_s15 = sphi %s494_s15, %s14_s15  }
   0x2   : > { %p174_p1 = scmp.lt.s32.totalorder %s460_s15, 3 }
   0x4   : > { %p175_p2 = pnand %p412_p0, %p174_p1 }
   0x5   : > { %s413_s19 = sshll.u32 (!%p175_p2), %s408_s16, 1  ;;  %s466_s28 = smov (!%p175_p2), 96  }
   0x6   : > { %178 = sbr.rel (%p175_p2) target bundleno = 279 (0x117), region = 36  ;;  %p206_p3 = scmp.lt.s32.totalorder (!%p175_p2), %s413_s19, 3 }
   0x7   : > { %s467_s29 = smov (!%p175_p2), 64   ;;  %s468_s30 = smov (!%p175_p2), 32  }
   0xb   : > { %v431_v0 = vld [vmem:[%s530_s2] sm:$0xff]  ;;  %v462_v1 = vmov 1   ;;  %v463_v2 = vmov 2   ;;  %v464_v3 = vmov 3   ;;  %s534_s19 = smov (!%p206_p3, %s413_s19), 3  ;;  %vm239_vm0 = vcmask 130048  }
   0xc   : > { %447 = vset.pattern.permute.xlu0 %v462_v1  ;;  %448 = vset.pattern.permute.xlu1 %v463_v2  ;;  %s416_s20 = sshll.u32 %s534_s19, 3  ;;  %s414_s21 = sshll.u32 %s534_s19, 2  ;;  %v465_v7 = vmov 0   ;;  %v453_v26 = vld [vmem:[%s531_s3] ss:$0 sm:$0xff]  ;;  %vm337_vm1 = vcmask 261120  }
   0xd   : > { %250 = vmatpush.bf16.msra.mxu0 %v431_v0  ;;  %449 = vset.pattern.permute.xlu2 %v464_v3  ;;  %s215_s24 = scalar_lea.vmem %s529_s1, %s416_s20  ;;  %s209_s27 = scalar_lea.vmem %s528_s0, %s414_s21 }
   0xe   : > { %v257_v4 = vld [vmem:[%s215_s24] sm:$0xff]  ;;  %v258_v6 = vld [vmem:[%s215_s24 + $0x8] sm:$0xff]  ;;  %s221_s9 = scalar_lea.vmem %s532_s4, %s416_s20 }
   0xf   : > { %278 = vperm.xlu0 %447, %v257_v4   ;;  %v430_v5 = vld [vmem:[%s209_s27] sm:$0xff]  ;;  %298 = vperm.xlu1 %448, %v257_v4  }
  0x10   : > { %318 = vperm.xlu2 %449, %v257_v4   ;;  %427 = vmatmul.msk.bf16.vlgmr.msra.gmra.mxu0 %vm239_vm0, %v430_v5 }
  0x17   : > { %282 = vperm.xlu0 %447, %v258_v6   ;;  %302 = vperm.xlu1 %448, %v258_v6  }
  0x18   : > { %322 = vperm.xlu2 %449, %v258_v6  }
  0x1f   : > { %450 = vset.pattern.permute.xlu0 %v465_v7  ;;  %451 = vset.pattern.permute.xlu1 %v465_v7 }
  0x20   : > { %262 = vperm.xlu0 %450, %v257_v4   ;;  %267 = vperm.xlu1 %451, %v258_v6  }
  0x28   : > { %452 = vset.pattern.permute.xlu0 %v464_v3 }
  0x6a   : > { %v319_v12 = vpop.permute.xlu2 %318 }
  0x72   : > { %v323_v19 = vpop.permute.xlu2 %322 }
  0x81   : > { %v279_v8 = vpop.permute.xlu0 %278  ;;  %v299_v9 = vpop.permute.xlu1 %298 }
  0x89   : > { %v283_v13 = vpop.permute.xlu0 %282  ;;  %v303_v14 = vpop.permute.xlu1 %302 }
  0x8d   : > { %v252_v10 = vpop.f32.mrf.mxu0 }
  0x8e   : > { %v285_v11 = vmul.f32 %v279_v8, %v252_v10  ;;  %v305_v18 = vmul.f32 %v299_v9, %v252_v10  ;;  %v325_v21 = vmul.f32 %v319_v12, %v252_v10 }
  0x90   : > { %289 = vrot.lane.b32.xlu2 %v285_v11, %s466_s28 }
  0x92   : > { %v268_v23 = vpop.permute.xlu1 %267  ;;  %v263_v24 = vpop.permute.xlu0 %262 }
  0x93   : > { %v270_v27 = vmul.f32 %v263_v24, %v252_v10 }
  0x95   : > { %v254_v15 = vpop.f32.mrf.mxu0  ;;  %v275_v32 = vadd.f32 %v453_v26, %v270_v27 }
  0x96   : > { %v286_v16 = vmul.f32 %v283_v13, %v254_v15  ;;  %v306_v17 = vmul.f32 %v303_v14, %v254_v15  ;;  %v326_v20 = vmul.f32 %v323_v19, %v254_v15  ;;  %v271_v25 = vmul.f32 %v268_v23, %v254_v15 }
  0x98   : > { %309 = vrot.lane.b32.xlu2 %v305_v18, %s467_s29  ;;  %311 = vrot.lane.b32.xlu0 %v306_v17, %s467_s29  ;;  %v276_v30 = vadd.f32 %v453_v26, %v271_v25 }
  0x99   : > { %291 = vrot.lane.b32.xlu1 %v286_v16, %s466_s28 }
  0xa0   : > { %331 = vrot.lane.b32.xlu2 %v326_v20, %s468_s30 }
  0xa1   : > { %329 = vrot.lane.b32.xlu1 %v325_v21, %s468_s30 }
  0xea   : > { %v290_v22 = vpop.permute.xlu2 %289 }
  0xeb   : > { %v295_v33 = vadd.f32 %v290_v22, %v275_v32 }
  0xf2   : > { %v310_v28 = vpop.permute.xlu2 %309 }
  0xf3   : > { %v315_v36 = vadd.f32 %v310_v28, %v295_v33 }
  0xfa   : > { %v332_v38 = vpop.permute.xlu2 %331 }
 0x10a   : > { %v312_v34 = vpop.permute.xlu0 %311 }
 0x10b   : > { %v292_v29 = vpop.permute.xlu1 %291 }
 0x10c   : > { %v296_v31 = vadd.f32 %v292_v29, %v276_v30 }
 0x10e   : > { %v316_v35 = vadd.f32 %v312_v34, %v296_v31 }
 0x110   : > { %v336_v40 = vadd.f32 %v332_v38, %v316_v35 }
 0x112   : > { %339 = vst.msk [vmem:[%s221_s9 + $0x8] sm:$0xff] %vm337_vm1, %v336_v40 }
 0x113   : > { %v330_v37 = vpop.permute.xlu1 %329 }
 0x114   : > { %v335_v39 = vadd.f32 %v330_v37, %v315_v36 }
 0x116   : > { %338 = vst.msk [vmem:[%s221_s9] sm:$0xff] %vm337_vm1, %v335_v39 }
 0x117 PF: > { %s14_s15 = sadd.s32 1, %s460_s15  }
 0x118   : > { %p11_p4 = scmp.ge.s32.totalorder %s14_s15, 4  }
 0x11a   :  { %13 = sbr.rel (!%p11_p4) target bundleno = 1 (0x1), region = 69 }

</bundles_post_ra>
